<compile_context>
chip_gen: v7x
topology: tpu7x:2x2x1
jax: 0.10.0
libtpu: 0.0.40
codegen_flags: <defaults>
</compile_context>

<pallas_src>
import functools

import jax
import jax.numpy as jnp
from jax import lax
from jax.experimental import pallas as pl
from jax.experimental.pallas import tpu as pltpu


def _round_up(v, m):
    return ((v + m - 1) // m) * m


def _remap_kernel(kmin_ref, kmax_ref, x_ref, map_ref, out_ref, *,
                  h_in, w_in, weight_dtype):
    # kmin_ref/kmax_ref: (N * num_j,) int32 in SMEM (scalar prefetch)
    # x_ref:   (1, C, THW)  one batch element, one HW tile (spatially flattened)
    # map_ref: (1, 2, TP)   row 0 = normalized x, row 1 = normalized y, one P tile
    # out_ref: (1, C, TP)   f32 output tile, resident across the k (HW) axis
    i = pl.program_id(0)
    j = pl.program_id(1)
    k = pl.program_id(2)
    num_j = pl.num_programs(1)
    thw = x_ref.shape[2]

    @pl.when(k == 0)
    def _():
        out_ref[...] = jnp.zeros_like(out_ref)

    idx = i * num_j + j
    kmin = kmin_ref[idx]
    kmax = kmax_ref[idx]

    # Block-sparse pruning: skip (j, k) tiles whose HW band cannot be touched.
    @pl.when((k >= kmin) & (k <= kmax))
    def _():
        x = x_ref[0].astype(weight_dtype)     # (C, THW)
        m = map_ref[0]                        # (2, TP)
        gx = m[0:1, :]                        # (1, TP)
        gy = m[1:2, :]                        # (1, TP)

        # align_corners=False unnormalization (PyTorch default when align_corners=None)
        ix = ((gx + 1.0) * w_in - 1.0) * 0.5
        iy = ((gy + 1.0) * h_in - 1.0) * 0.5

        x0f = jnp.floor(ix)
        y0f = jnp.floor(iy)
        x0 = x0f.astype(jnp.int32)
        y0 = y0f.astype(jnp.int32)
        x1 = x0 + 1
        y1 = y0 + 1

        wx1 = ix - x0f
        wx0 = 1.0 - wx1
        wy1 = iy - y0f
        wy0 = 1.0 - wy1

        # zeros padding: out-of-bounds corner contributes nothing.
        vx0 = (x0 >= 0) & (x0 < w_in)
        vx1 = (x1 >= 0) & (x1 < w_in)
        vy0 = (y0 >= 0) & (y0 < h_in)
        vy1 = (y1 >= 0) & (y1 < h_in)

        w00 = jnp.where(vy0 & vx0, wy0 * wx0, 0.0).astype(weight_dtype)
        w01 = jnp.where(vy0 & vx1, wy0 * wx1, 0.0).astype(weight_dtype)
        w10 = jnp.where(vy1 & vx0, wy1 * wx0, 0.0).astype(weight_dtype)
        w11 = jnp.where(vy1 & vx1, wy1 * wx1, 0.0).astype(weight_dtype)

        tp = m.shape[1]
        # Grid-invariant iota; the k*THW tile offset lives in the (1, TP) flat00 vector.
        hw_iota = lax.broadcasted_iota(jnp.int32, (thw, tp), 0)      # (THW, TP)
        flat00 = y0 * w_in + x0 - k * thw                            # (1, TP), UNCLIPPED
        d = hw_iota - flat00                                         # (THW, TP)

        zero = jnp.zeros((), weight_dtype)
        if w_in == 1:
            # offsets 1 and w_in collide -> combine the two corners.
            wmat = jnp.where(d == 0, w00,
                   jnp.where(d == 1, w01 + w10,
                   jnp.where(d == 2, w11, zero)))
        else:
            wmat = jnp.where(d == 0, w00,
                   jnp.where(d == 1, w01,
                   jnp.where(d == w_in, w10,
                   jnp.where(d == w_in + 1, w11, zero))))            # (THW, TP)

        out_ref[0] += jnp.dot(x, wmat, preferred_element_type=jnp.float32)


def _tile_ranges(m_flat, h_in, w_in, thw, tp, num_j):
    """Per-(n, P-tile) conservative [kmin, kmax] band of touched HW tiles."""
    gx = m_flat[:, 0, :]                         # (N, P_pad)
    gy = m_flat[:, 1, :]
    ix = ((gx + 1.0) * w_in - 1.0) * 0.5
    iy = ((gy + 1.0) * h_in - 1.0) * 0.5
    x0 = jnp.floor(ix).astype(jnp.int32)
    y0 = jnp.floor(iy).astype(jnp.int32)
    x1 = x0 + 1
    y1 = y0 + 1
    hw = h_in * w_in
    any_valid = (x1 >= 0) & (x0 <= w_in - 1) & (y1 >= 0) & (y0 <= h_in - 1)
    x0c = jnp.clip(x0, 0, w_in - 1)
    y0c = jnp.clip(y0, 0, h_in - 1)
    x1c = jnp.clip(x1, 0, w_in - 1)
    y1c = jnp.clip(y1, 0, h_in - 1)
    flat_lo = jnp.where(any_valid, y0c * w_in + x0c, hw)             # conservative lo
    flat_hi = jnp.where(any_valid, y1c * w_in + x1c, -1)             # conservative hi
    n = gx.shape[0]
    flat_lo = flat_lo.reshape(n, num_j, tp).min(axis=-1)
    flat_hi = flat_hi.reshape(n, num_j, tp).max(axis=-1)
    kmin = (flat_lo // thw).astype(jnp.int32).reshape(-1)
    kmax = (flat_hi // thw).astype(jnp.int32).reshape(-1)            # empty tile -> -1
    return kmin, kmax


def remap(tensor, grid_map, sample_mode="bilinear", padding_mode="zeros",
          align_corners=None, *, tile_p=1024, tile_hw=1024,
          weight_dtype=jnp.float32):
    """Pallas equivalent of Remap.forward(tensor, map)."""
    assert sample_mode == "bilinear" and padding_mode == "zeros" and not align_corners
    n, c, h_in, w_in = tensor.shape
    _, h_out, w_out, two = grid_map.shape
    assert two == 2
    hw = h_in * w_in
    p = h_out * w_out

    # Lane-dense tiles (multiples of 128); pad the arrays up to whole tiles.
    tp = min(tile_p, _round_up(p, 128))
    thw = min(tile_hw, _round_up(hw, 128))
    p_pad = _round_up(p, tp)
    hw_pad = _round_up(hw, thw)

    # v7x has 2 TensorCores: make sure a single-image call still exposes >= 2
    # parallel blocks along the P axis.
    if n == 1 and p_pad // tp == 1 and p_pad > 128:
        tp = _round_up(max(p_pad // 2, 128), 128)
        p_pad = _round_up(p, tp)

    num_j = p_pad // tp
    num_k = hw_pad // thw

    # x stays in its native dtype (cast per-tile in-kernel); only pad if needed.
    x_flat = tensor.reshape(n, c, hw)
    if hw_pad != hw:
        x_flat = jnp.pad(x_flat, ((0, 0), (0, 0), (0, hw_pad - hw)))
    # map -> (N, 2, P); pad columns with an out-of-bounds sentinel so they do no
    # W-build work and don't widen the pruning bands.
    m_flat = grid_map.reshape(n, p, 2).transpose(0, 2, 1).astype(jnp.float32)
    if p_pad != p:
        m_flat = jnp.pad(m_flat, ((0, 0), (0, 0), (0, p_pad - p)),
                         constant_values=-10.0)

    kmin, kmax = _tile_ranges(m_flat, h_in, w_in, thw, tp, num_j)

    grid = (n, num_j, num_k)
    kernel = functools.partial(_remap_kernel, h_in=h_in, w_in=w_in,
                               weight_dtype=weight_dtype)

    # Advisory cost estimate (upper bound, ignores pruning).
    flops = int(n * (2 * c + 6) * hw_pad * p_pad)
    bytes_accessed = int(4 * (n * num_j * c * hw_pad        # x re-read per P tile
                              + n * num_k * 2 * p_pad       # map re-read per HW tile
                              + n * c * p_pad))             # output

    out_flat = pl.pallas_call(
        kernel,
        out_shape=jax.ShapeDtypeStruct((n, c, p_pad), jnp.float32),
        grid_spec=pltpu.PrefetchScalarGridSpec(
            num_scalar_prefetch=2,
            grid=grid,
            in_specs=[
                pl.BlockSpec((1, c, thw), lambda i, j, k, kmn, kmx: (i, 0, k)),
                pl.BlockSpec((1, 2, tp), lambda i, j, k, kmn, kmx: (i, 0, j)),
            ],
            out_specs=pl.BlockSpec((1, c, tp), lambda i, j, k, kmn, kmx: (i, 0, j)),
        ),
        compiler_params=pltpu.CompilerParams(
            dimension_semantics=("parallel", "parallel", "arbitrary"),
            vmem_limit_bytes=32 * 1024 * 1024,
        ),
        cost_estimate=pl.CostEstimate(
            flops=flops, transcendentals=0, bytes_accessed=bytes_accessed),
    )(kmin, kmax, x_flat, m_flat)

    out = out_flat[:, :, :p]
    return out.reshape(n, c, h_out, w_out).astype(tensor.dtype)


def _grid_sample_ref(x, grid):
    """Pure-JAX reference (bilinear, zeros padding, align_corners=False)."""
    n, c, h, w = x.shape
    gx = grid[..., 0]
    gy = grid[..., 1]
    ix = ((gx + 1.0) * w - 1.0) * 0.5
    iy = ((gy + 1.0) * h - 1.0) * 0.5
    x0f = jnp.floor(ix)
    y0f = jnp.floor(iy)
    x0 = x0f.astype(jnp.int32)
    y0 = y0f.astype(jnp.int32)
    x1 = x0 + 1
    y1 = y0 + 1
    wx1 = ix - x0f
    wx0 = 1.0 - wx1
    wy1 = iy - y0f
    wy0 = 1.0 - wy1

    def gather(yc, xc):
        valid = ((xc >= 0) & (xc < w) & (yc >= 0) & (yc < h)).astype(x.dtype)
        xs = jnp.clip(xc, 0, w - 1)
        ys = jnp.clip(yc, 0, h - 1)

        def per_batch(img, ysb, xsb):
            return img[:, ysb, xsb]                  # (C, Ho, Wo)

        v = jax.vmap(per_batch)(x, ys, xs)           # (N, C, Ho, Wo)
        return v * valid[:, None]

    return (gather(y0, x0) * (wy0 * wx0)[:, None]
            + gather(y0, x1) * (wy0 * wx1)[:, None]
            + gather(y1, x0) * (wy1 * wx0)[:, None]
            + gather(y1, x1) * (wy1 * wx1)[:, None])


if __name__ == "__main__":
    key = jax.random.PRNGKey(0)
    k1, k2, k3, k4, k5, k6 = jax.random.split(key, 6)

    # Case 1: lane-aligned shapes (P and HW already multiples of 128).
    n, c, h, w = 2, 4, 16, 16
    h_out, w_out = 16, 16
    x = jax.random.normal(k1, (n, c, h, w), dtype=jnp.float32)
    # coords slightly outside [-1, 1] exercise zeros padding
    grid_map = jax.random.uniform(k2, (n, h_out, w_out, 2), dtype=jnp.float32,
                                  minval=-1.1, maxval=1.1)
    out = jax.block_until_ready(remap(x, grid_map))
    ref = _grid_sample_ref(x, grid_map)
    assert out.shape == (n, c, h_out, w_out)
    err1 = float(jnp.max(jnp.abs(out - ref)))
    assert err1 < 1e-4, f"case1 max abs err {err1}"

    # Case 2: ragged shapes exercising the P / HW padding paths.
    n2, c2, h2, w2 = 2, 4, 20, 14          # HW = 280 -> padded to 384
    h_out2, w_out2 = 12, 10                # P  = 120 -> padded to 128
    x2 = jax.random.normal(k3, (n2, c2, h2, w2), dtype=jnp.float32)
    grid_map2 = jax.random.uniform(k4, (n2, h_out2, w_out2, 2), dtype=jnp.float32,
                                   minval=-1.1, maxval=1.1)
    out2 = jax.block_until_ready(remap(x2, grid_map2))
    ref2 = _grid_sample_ref(x2, grid_map2)
    assert out2.shape == (n2, c2, h_out2, w_out2)
    err2 = float(jnp.max(jnp.abs(out2 - ref2)))
    assert err2 < 1e-4, f"case2 max abs err {err2}"

    # Case 3: n=1 (exercises the >=2 parallel P-block split), multiple HW tiles
    # (hw=1600 -> 2 k-blocks with thw=1024) and a map confined to the top band of
    # the image so the pruning path actually skips the second HW tile.
    n3, c3, h3, w3 = 1, 3, 40, 40
    h_out3, w_out3 = 16, 16
    x3 = jax.random.normal(k5, (n3, c3, h3, w3), dtype=jnp.float32)
    gm_x = jax.random.uniform(k6, (n3, h_out3, w_out3, 1), dtype=jnp.float32,
                              minval=-1.1, maxval=1.1)
    gm_y = jax.random.uniform(k2, (n3, h_out3, w_out3, 1), dtype=jnp.float32,
                              minval=-1.0, maxval=-0.5)
    grid_map3 = jnp.concatenate([gm_x, gm_y], axis=-1)
    out3 = jax.block_until_ready(remap(x3, grid_map3, tile_hw=1024))
    ref3 = _grid_sample_ref(x3, grid_map3)
    assert out3.shape == (n3, c3, h_out3, w_out3)
    err3 = float(jnp.max(jnp.abs(out3 - ref3)))
    assert err3 < 1e-4, f"case3 max abs err {err3}"

    # Case 4: bf16 weight/W build (v6e/v7x fast path), looser tolerance.
    out4 = jax.block_until_ready(remap(x, grid_map, weight_dtype=jnp.bfloat16))
    err4 = float(jnp.max(jnp.abs(out4 - ref)))
    assert err4 < 1e-1, f"case4 (bf16) max abs err {err4}"

    print("KERNEL_OK")
</pallas_src>

<mosaic_0001>
module attributes {stable_mosaic.version = 11 : i64} {
  func.func @_remap_kernel(%arg0: i32, %arg1: i32, %arg2: i32, %arg3: memref<2xi32, #tpu.memory_space<smem>>, %arg4: memref<2xi32, #tpu.memory_space<smem>>, %arg5: memref<1x4x256xf32, #tpu.memory_space<vmem>>, %arg6: memref<1x2x256xf32, #tpu.memory_space<vmem>>, %arg7: memref<1x4x256xf32, #tpu.memory_space<vmem>>) attributes {dimension_semantics = [#tpu.dimension_semantics<parallel>, #tpu.dimension_semantics<parallel>, #tpu.dimension_semantics<arbitrary>], iteration_bounds = array<i64: 2, 1, 1>, scalar_prefetch = 2 : i64, scratch_operands = 0 : i64, tpu.core_type = #tpu.core_type<tc>, window_params = [{transform_indices = @transform_0, window_bounds = array<i64: 1, 4, 256>}, {transform_indices = @transform_1, window_bounds = array<i64: 1, 2, 256>}, {transform_indices = @transform_2, window_bounds = array<i64: 1, 4, 256>}]} {
    %c0_i32 = arith.constant 0 : i32
    %0 = arith.cmpi eq, %arg2, %c0_i32 : i32
    %1 = arith.extui %0 : i1 to i32
    %c0_i32_0 = arith.constant 0 : i32
    %2 = arith.cmpi ne, %1, %c0_i32_0 : i32
    scf.if %2 {
      %cst = arith.constant 0.000000e+00 : f32
      %14 = vector.broadcast %cst : f32 to vector<1x4x256xf32>
      %c0 = arith.constant 0 : index
      %c0_2 = arith.constant 0 : index
      %c0_3 = arith.constant 0 : index
      %15 = vector.load %arg7[%c0, %c0_2, %c0_3] : memref<1x4x256xf32, #tpu.memory_space<vmem>>, vector<1x4x256xf32>
      tpu.vector_store %arg7[%c0, %c0_2, %c0_3], %14 {strides = array<i32>} : memref<1x4x256xf32, #tpu.memory_space<vmem>>, vector<1x4x256xf32>,
    } else {
    }
    %c1_i32 = arith.constant 1 : i32
    %3 = arith.muli %arg0, %c1_i32 : i32
    %4 = arith.addi %3, %arg1 : i32
    %5 = arith.index_cast %4 : i32 to index
    %6 = memref.load %arg3[%5] : memref<2xi32, #tpu.memory_space<smem>>
    %7 = arith.index_cast %4 : i32 to index
    %8 = memref.load %arg4[%7] : memref<2xi32, #tpu.memory_space<smem>>
    %9 = arith.cmpi sge, %arg2, %6 : i32
    %10 = arith.cmpi sle, %arg2, %8 : i32
    %11 = arith.andi %9, %10 : i1
    %12 = arith.extui %11 : i1 to i32
    %c0_i32_1 = arith.constant 0 : i32
    %13 = arith.cmpi ne, %12, %c0_i32_1 : i32
    scf.if %13 {
      %c0 = arith.constant 0 : index
      %c0_2 = arith.constant 0 : index
      %c0_3 = arith.constant 0 : index
      %14 = vector.load %arg5[%c0, %c0_2, %c0_3] : memref<1x4x256xf32, #tpu.memory_space<vmem>>, vector<1x4x256xf32>
      %15 = vector.shape_cast %14 : vector<1x4x256xf32> to vector<4x256xf32>
      %c0_4 = arith.constant 0 : index
      %c0_5 = arith.constant 0 : index
      %c0_6 = arith.constant 0 : index
      %16 = vector.load %arg6[%c0_4, %c0_5, %c0_6] : memref<1x2x256xf32, #tpu.memory_space<vmem>>, vector<1x2x256xf32>
      %17 = vector.shape_cast %16 : vector<1x2x256xf32> to vector<2x256xf32>
      %18 = vector.extract_strided_slice %17 {offsets = [0, 0], sizes = [1, 256], strides = [1, 1]} : vector<2x256xf32> to vector<1x256xf32>
      %19 = vector.extract_strided_slice %17 {offsets = [1, 0], sizes = [1, 256], strides = [1, 1]} : vector<2x256xf32> to vector<1x256xf32>
      %cst = arith.constant 1.000000e+00 : f32
      %20 = vector.broadcast %cst : f32 to vector<1x256xf32>
      %21 = arith.addf %18, %20 : vector<1x256xf32>
      %cst_7 = arith.constant 1.600000e+01 : f32
      %22 = vector.broadcast %cst_7 : f32 to vector<1x256xf32>
      %23 = arith.mulf %21, %22 : vector<1x256xf32>
      %cst_8 = arith.constant 1.000000e+00 : f32
      %24 = vector.broadcast %cst_8 : f32 to vector<1x256xf32>
      %25 = arith.subf %23, %24 : vector<1x256xf32>
      %cst_9 = arith.constant 5.000000e-01 : f32
      %26 = vector.broadcast %cst_9 : f32 to vector<1x256xf32>
      %27 = arith.mulf %25, %26 : vector<1x256xf32>
      %cst_10 = arith.constant 1.000000e+00 : f32
      %28 = vector.broadcast %cst_10 : f32 to vector<1x256xf32>
      %29 = arith.addf %19, %28 : vector<1x256xf32>
      %cst_11 = arith.constant 1.600000e+01 : f32
      %30 = vector.broadcast %cst_11 : f32 to vector<1x256xf32>
      %31 = arith.mulf %29, %30 : vector<1x256xf32>
      %cst_12 = arith.constant 1.000000e+00 : f32
      %32 = vector.broadcast %cst_12 : f32 to vector<1x256xf32>
      %33 = arith.subf %31, %32 : vector<1x256xf32>
      %cst_13 = arith.constant 5.000000e-01 : f32
      %34 = vector.broadcast %cst_13 : f32 to vector<1x256xf32>
      %35 = arith.mulf %33, %34 : vector<1x256xf32>
      %36 = math.floor %27 : vector<1x256xf32>
      %37 = math.floor %35 : vector<1x256xf32>
      %38 = arith.fptosi %36 : vector<1x256xf32> to vector<1x256xi32>
      %39 = arith.fptosi %37 : vector<1x256xf32> to vector<1x256xi32>
      %c1_i32_14 = arith.constant 1 : i32
      %40 = vector.broadcast %c1_i32_14 : i32 to vector<1x256xi32>
      %41 = arith.addi %38, %40 : vector<1x256xi32>
      %c1_i32_15 = arith.constant 1 : i32
      %42 = vector.broadcast %c1_i32_15 : i32 to vector<1x256xi32>
      %43 = arith.addi %39, %42 : vector<1x256xi32>
      %44 = arith.subf %27, %36 : vector<1x256xf32>
      %cst_16 = arith.constant 1.000000e+00 : f32
      %45 = vector.broadcast %cst_16 : f32 to vector<1x256xf32>
      %46 = arith.subf %45, %44 : vector<1x256xf32>
      %47 = arith.subf %35, %37 : vector<1x256xf32>
      %cst_17 = arith.constant 1.000000e+00 : f32
      %48 = vector.broadcast %cst_17 : f32 to vector<1x256xf32>
      %49 = arith.subf %48, %47 : vector<1x256xf32>
      %c0_i32_18 = arith.constant 0 : i32
      %50 = vector.broadcast %c0_i32_18 : i32 to vector<1x256xi32>
      %51 = arith.cmpi sge, %38, %50 : vector<1x256xi32>
      %c16_i32 = arith.constant 16 : i32
      %52 = vector.broadcast %c16_i32 : i32 to vector<1x256xi32>
      %53 = arith.cmpi slt, %38, %52 : vector<1x256xi32>
      %54 = arith.andi %51, %53 : vector<1x256xi1>
      %c0_i32_19 = arith.constant 0 : i32
      %55 = vector.broadcast %c0_i32_19 : i32 to vector<1x256xi32>
      %56 = arith.cmpi sge, %41, %55 : vector<1x256xi32>
      %c16_i32_20 = arith.constant 16 : i32
      %57 = vector.broadcast %c16_i32_20 : i32 to vector<1x256xi32>
      %58 = arith.cmpi slt, %41, %57 : vector<1x256xi32>
      %59 = arith.andi %56, %58 : vector<1x256xi1>
      %c0_i32_21 = arith.constant 0 : i32
      %60 = vector.broadcast %c0_i32_21 : i32 to vector<1x256xi32>
      %61 = arith.cmpi sge, %39, %60 : vector<1x256xi32>
      %c16_i32_22 = arith.constant 16 : i32
      %62 = vector.broadcast %c16_i32_22 : i32 to vector<1x256xi32>
      %63 = arith.cmpi slt, %39, %62 : vector<1x256xi32>
      %64 = arith.andi %61, %63 : vector<1x256xi1>
      %c0_i32_23 = arith.constant 0 : i32
      %65 = vector.broadcast %c0_i32_23 : i32 to vector<1x256xi32>
      %66 = arith.cmpi sge, %43, %65 : vector<1x256xi32>
      %c16_i32_24 = arith.constant 16 : i32
      %67 = vector.broadcast %c16_i32_24 : i32 to vector<1x256xi32>
      %68 = arith.cmpi slt, %43, %67 : vector<1x256xi32>
      %69 = arith.andi %66, %68 : vector<1x256xi1>
      %70 = arith.andi %64, %54 : vector<1x256xi1>
      %71 = arith.mulf %49, %46 : vector<1x256xf32>
      %cst_25 = arith.constant 0.000000e+00 : f32
      %72 = vector.broadcast %cst_25 : f32 to vector<1x256xf32>
      %73 = arith.select %70, %71, %72 : vector<1x256xi1>, vector<1x256xf32>
      %74 = arith.andi %64, %59 : vector<1x256xi1>
      %75 = arith.mulf %49, %44 : vector<1x256xf32>
      %cst_26 = arith.constant 0.000000e+00 : f32
      %76 = vector.broadcast %cst_26 : f32 to vector<1x256xf32>
      %77 = arith.select %74, %75, %76 : vector<1x256xi1>, vector<1x256xf32>
      %78 = arith.andi %69, %54 : vector<1x256xi1>
      %79 = arith.mulf %47, %46 : vector<1x256xf32>
      %cst_27 = arith.constant 0.000000e+00 : f32
      %80 = vector.broadcast %cst_27 : f32 to vector<1x256xf32>
      %81 = arith.select %78, %79, %80 : vector<1x256xi1>, vector<1x256xf32>
      %82 = arith.andi %69, %59 : vector<1x256xi1>
      %83 = arith.mulf %47, %44 : vector<1x256xf32>
      %cst_28 = arith.constant 0.000000e+00 : f32
      %84 = vector.broadcast %cst_28 : f32 to vector<1x256xf32>
      %85 = arith.select %82, %83, %84 : vector<1x256xi1>, vector<1x256xf32>
      %86 = tpu.iota {dimensions = array<i32: 0>} : vector<256x256xi32>
      %c16_i32_29 = arith.constant 16 : i32
      %87 = vector.broadcast %c16_i32_29 : i32 to vector<1x256xi32>
      %88 = arith.muli %39, %87 : vector<1x256xi32>
      %89 = arith.addi %88, %38 : vector<1x256xi32>
      %c256_i32 = arith.constant 256 : i32
      %90 = arith.muli %arg2, %c256_i32 : i32
      %91 = vector.broadcast %90 : i32 to vector<1x256xi32>
      %92 = arith.subi %89, %91 : vector<1x256xi32>
      %93 = vector.broadcast %92 : vector<1x256xi32> to vector<256x256xi32>
      %94 = arith.subi %86, %93 : vector<256x256xi32>
      %c0_i32_30 = arith.constant 0 : i32
      %95 = vector.broadcast %c0_i32_30 : i32 to vector<256x256xi32>
      %96 = arith.cmpi eq, %94, %95 : vector<256x256xi32>
      %c1_i32_31 = arith.constant 1 : i32
      %97 = vector.broadcast %c1_i32_31 : i32 to vector<256x256xi32>
      %98 = arith.cmpi eq, %94, %97 : vector<256x256xi32>
      %c16_i32_32 = arith.constant 16 : i32
      %99 = vector.broadcast %c16_i32_32 : i32 to vector<256x256xi32>
      %100 = arith.cmpi eq, %94, %99 : vector<256x256xi32>
      %c17_i32 = arith.constant 17 : i32
      %101 = vector.broadcast %c17_i32 : i32 to vector<256x256xi32>
      %102 = arith.cmpi eq, %94, %101 : vector<256x256xi32>
      %cst_33 = arith.constant 0.000000e+00 : f32
      %103 = vector.shape_cast %85 : vector<1x256xf32> to vector<1x256xf32>
      %104 = vector.broadcast %103 : vector<1x256xf32> to vector<256x256xf32>
      %105 = vector.broadcast %cst_33 : f32 to vector<256x256xf32>
      %106 = arith.select %102, %104, %105 : vector<256x256xi1>, vector<256x256xf32>
      %107 = vector.shape_cast %81 : vector<1x256xf32> to vector<1x256xf32>
      %108 = vector.broadcast %107 : vector<1x256xf32> to vector<256x256xf32>
      %109 = arith.select %100, %108, %106 : vector<256x256xi1>, vector<256x256xf32>
      %110 = vector.shape_cast %77 : vector<1x256xf32> to vector<1x256xf32>
      %111 = vector.broadcast %110 : vector<1x256xf32> to vector<256x256xf32>
      %112 = arith.select %98, %111, %109 : vector<256x256xi1>, vector<256x256xf32>
      %113 = vector.shape_cast %73 : vector<1x256xf32> to vector<1x256xf32>
      %114 = vector.broadcast %113 : vector<1x256xf32> to vector<256x256xf32>
      %115 = arith.select %96, %114, %112 : vector<256x256xi1>, vector<256x256xf32>
      %c0_34 = arith.constant 0 : index
      %c0_35 = arith.constant 0 : index
      %c0_36 = arith.constant 0 : index
      %116 = vector.load %arg7[%c0_34, %c0_35, %c0_36] : memref<1x4x256xf32, #tpu.memory_space<vmem>>, vector<1x4x256xf32>
      %117 = vector.shape_cast %116 : vector<1x4x256xf32> to vector<4x256xf32>
      %cst_37 = arith.constant dense<0.000000e+00> : vector<4x256xf32>
      %118 = tpu.matmul %15, %115, %cst_37 {dimension_numbers = #tpu.dot_dimension_numbers<[1], [0], [0], [1], [0, 0, 1, 1], [], []>} : vector<4x256xf32>, vector<256x256xf32>, vector<4x256xf32> -> vector<4x256xf32>
      %119 = arith.addf %117, %118 : vector<4x256xf32>
      %c0_38 = arith.constant 0 : index
      %c0_39 = arith.constant 0 : index
      %c0_40 = arith.constant 0 : index
      %120 = vector.load %arg7[%c0_38, %c0_39, %c0_40] : memref<1x4x256xf32, #tpu.memory_space<vmem>>, vector<1x4x256xf32>
      %121 = vector.shape_cast %120 : vector<1x4x256xf32> to vector<4x256xf32>
      %122 = vector.shape_cast %119 : vector<4x256xf32> to vector<1x4x256xf32>
      tpu.vector_store %arg7[%c0_38, %c0_39, %c0_40], %122 {strides = array<i32>} : memref<1x4x256xf32, #tpu.memory_space<vmem>>, vector<1x4x256xf32>,
    } else {
    }
    return
  }
  func.func @transform_0(%arg0: i32, %arg1: i32, %arg2: i32, %arg3: memref<2xi32, #tpu.memory_space<smem>>, %arg4: memref<2xi32, #tpu.memory_space<smem>>) -> (i32, i32, i32) {
    %c0_i32 = arith.constant 0 : i32
    %c0_i32_0 = arith.constant 0 : i32
    return %arg0, %c0_i32, %arg2 : i32, i32, i32
  }
  func.func @transform_1(%arg0: i32, %arg1: i32, %arg2: i32, %arg3: memref<2xi32, #tpu.memory_space<smem>>, %arg4: memref<2xi32, #tpu.memory_space<smem>>) -> (i32, i32, i32) {
    %c0_i32 = arith.constant 0 : i32
    %c0_i32_0 = arith.constant 0 : i32
    return %arg0, %c0_i32, %arg1 : i32, i32, i32
  }
  func.func @transform_2(%arg0: i32, %arg1: i32, %arg2: i32, %arg3: memref<2xi32, #tpu.memory_space<smem>>, %arg4: memref<2xi32, #tpu.memory_space<smem>>) -> (i32, i32, i32) {
    %c0_i32 = arith.constant 0 : i32
    %c0_i32_0 = arith.constant 0 : i32
    return %arg0, %c0_i32, %arg1 : i32, i32, i32
  }
}

</mosaic_0001>

<bundles_post_ra>
// kernel: tpu_custom_call.1
= control target key start
LH: loop header
LB: loop body
LE: loop exit
PB: predicated region body
PF: predicated region fallthrough
CT: control target
= control target key end

     0   :  { %s2393_s0 = inlined_call_operand.hbm [shape: s32[2], index: 0, kind: input, shape index: {}]   ;;  %s2394_s2 = inlined_call_operand.hbm [shape: f32[2,4,256], index: 2, kind: input, shape index: {}]   ;;  %s2395_s3 = inlined_call_operand.vmem [shape: f32[2,2,256], index: 3, kind: input, shape index: {}]   ;;  %s2396_s4 = inlined_call_operand.hbm [shape: f32[2,4,256], index: 4, kind: output, shape index: {}]   ;;  %s2397_s1 = inlined_call_operand.vmem [shape: s32[2], index: 1, kind: input, shape index: {}]  }
   0x1   :  { %s1354_s17 = scalar_lea.hbm %s2393_s0, 16 }
   0x2   :  { %p1355_p0 = scmp.ne.s32.totalorder %s2393_s0, %s1354_s17  ;;  %p1358_p1 = scmp.lt.u32.totalorder %s1354_s17, %s2393_s0 }
   0x4   :  { %p1360_p2 = pnand %p1358_p1, %p1355_p0 }
   0x6   :  { %1363 = shalt.err (!%p1360_p2)  }
   0x7   :  { %s1492_s22 = smov [#allocation3]   ;;  %s11_s27 = sshll.u32 %s2397_s1, 4  ;;  %s12_s27 = int_to_ptr.vmem [resolvable:$true] %s11_s27 }
   0x8   :  { %10 = dma.hbm_to_smem %s2393_s0, 16, %s1492_s22, [#allocation2] }
   0x9   :  { %s1364_s28 = scalar_lea.vmem %s12_s27, 16  ;;  %p1369_p4 = scmp.lt.s32.totalorder %s12_s27, %s12_s27 }
   0xa   :  { %p1365_p3 = scmp.ne.s32.totalorder %s12_s27, %s1364_s28  ;;  %p1370_p5 = scmp.lt.s32.totalorder %s1364_s28, %s1364_s28 }
   0xc   :  { %p1371_p6 = por %p1370_p5, %p1369_p4 }
   0xe   :  { %p1372_p7 = pnand %p1371_p6, %p1365_p3 }
  0x10   :  { %1375 = shalt.err (!%p1372_p7)  }
  0x11   :  { %s1493_s29 = smov [#allocation4]  }
  0x12   :  { %14 = dma.vmem_to_smem %s12_s27, 16, %s1493_s29, [#allocation2] }
  0x13   :  { %1458 = dma.done.wait [#allocation2], 32 }
  0x14   :  { %1459 = vsyncadd [#allocation2], 4294967264 }
  0x15   :  { %16 = sfence }
  0x16   :  { %17 = vsyncpa [#allocation6], 0 }
  0x17   :  { %19 = vsyncpa [#allocation6 + $0x1], 0 }
  0x18   :  { %20 = vsyncpa [#allocation7], 0 }
  0x19   :  { %22 = vsyncpa [#allocation7 + $0x1], 0  ;;  %s1538_s0 = smov 0   ;;  %s1540_s1 = smov 0  }
  0x1a   :  { %s1542_s30 = smov 0   ;;  %s1544_s5 = smov 0  }
  0x1b   :  { %s1546_s6 = smov 0   ;;  %s1548_s7 = smov 0  }
  0x1c LB: > { %s1198_s8 = sadd.s32 4294967295, %s1490_s7   ;;  %s1199_s9 = sadd.s32 4294967294, %s1490_s7   ;;  %s1490_s7 = sphi %s1548_s7, %s28_s7   ;;  %s1486_s6 = sphi %s1546_s6, %s2419_s6   ;;  %s1482_s5 = sphi %s1544_s5, %s2418_s5   ;;  %s1478_s30 = sphi %s1542_s30, %s2417_s30   ;;  %s1474_s1 = sphi %s1540_s1, %s2416_s1   ;;  %s1470_s0 = sphi %s1538_s0, %s2415_s0  }
  0x1d   : > { %s47_s10 = sadd.s32 1, %s1486_s6  ;;  %s56_s11 = sadd.s32 1, %s1478_s30 }
  0x1e   : > { %p49_p8 = scmp.ge.s32.totalorder %s47_s10, 2  ;;  %p63_p9 = scmp.ne.s32.totalorder %s1478_s30, %s1474_s1 }
  0x1f   : > { %p64_p10 = scmp.eq.s32.totalorder %s1490_s7, 0  ;;  %p69_p11 = scmp.ne.s32.totalorder %s1474_s1, %s1470_s0 }
  0x20   : > { %s2421_s10 = smov (%p49_p8, %s47_s10), 0  ;;  %p70_p13 = scmp.eq.s32.totalorder %s1198_s8, 0 }
  0x21   : > { %p1579_p12 = por %p64_p10, %p63_p9  ;;  %s51_s13 = ssub.s32 %s1486_s6, %s2421_s10 }
  0x22   : > { %p123_p0 = scmp.eq.s32.totalorder %s1198_s8, 1  ;;  %p54_p1 = scmp.eq.s32.totalorder %s51_s13, 0 }
  0x23   : > { %p1585_p2 = por %p70_p13, %p69_p11  ;;  %p129_p4 = scmp.eq.s32.totalorder %s1199_s9, 1 }
  0x24   : > { %p1589_p3 = por %p123_p0, %p63_p9  ;;  %p1299_p7 = scmp.lt.s32.totalorder %s1490_s7, 2 }
  0x25   : > { %s1594_s16 = scalar_select %p54_p1, %s1478_s30, %s56_s11  }
  0x26   : > { %s2401_s15 = scalar_select %p1589_p3, 1, 0 }
  0x27   : > { %p1596_p5 = por %p129_p4, %p69_p11  ;;  %s149_s18 = sand.u32 1, %s1478_s30  }
  0x28   : > { %s1202_s19 = sshll.u32 %s149_s18, 3  ;;  %s1218_s20 = sshll.u32 %s1486_s6, 7 }
  0x29   : > { %s2402_s17 = scalar_select %p1596_p5, 1, 0 }
  0x2a   : > { %s1607_s23 = scalar_lea.hbm %s2394_s2, %s1218_s20  ;;  %s153_s24 = scalar_lea.vmem [#allocation5], %s1202_s19 }
  0x2b   : > { %s163_s25 = sshll.u32 %s153_s24, 4  ;;  %p1613_p8 = pnand %p1299_p7, %p1579_p12  ;;  %s1609_s25 = int_to_ptr.vmem [resolvable:$true] %s163_s25 }
  0x2c   : > { %s150_s27 = scalar_lea.sflag [#allocation6], %s149_s18  ;;  %s1376_s28 = scalar_lea.hbm %s1607_s23, 128 }
  0x2d   : > { %p1377_p11 = scmp.ne.s32.totalorder %s1607_s23, %s1376_s28  ;;  %p1378_p13 = pneg %p1613_p8 }
  0x2e   : > { %s1381_s9 = scalar_lea.hbm %s2394_s2, 256  ;;  %p1382_p12 = scmp.lt.u32.totalorder %s1607_s23, %s2394_s2 }
  0x2f   : > { %p1379_p0 = pnand %p1378_p13, %p1377_p11  ;;  %p1383_p4 = scmp.lt.u32.totalorder %s1381_s9, %s1376_s28 }
  0x30   : > { %p1385_p6 = scmp.lt.u32.totalorder %s1376_s28, %s1607_s23 }
  0x31   : > { %p1380_p1 = pneg %p1379_p0  ;;  %p1384_p7 = por %p1383_p4, %p1382_p12 }
  0x33   : > { %p1386_p9 = por %p1385_p6, %p1384_p7 }
  0x35   : > { %p1387_p10 = pnand %p1386_p9, %p1380_p1 }
  0x37   : > { %1390 = shalt.err (!%p1387_p10)
}
  0x38   : > { %s1391_s13 = scalar_lea.vmem %s1609_s25, 128  ;;  %s1494_s18 = smov [#allocation5]  }
  0x39   : > { %p1392_p11 = scmp.ne.s32.totalorder %s1609_s25, %s1391_s13  ;;  %s1396_s19 = sshll.u32 %s1494_s18, 4  ;;  %s1397_s19 = int_to_ptr.vmem [resolvable:$false] %s1396_s19 }
  0x3a   : > { %s1398_s20 = scalar_lea.vmem %s1397_s19, 256  ;;  %p1399_p3 = scmp.lt.s32.totalorder %s1609_s25, %s1397_s19 }
  0x3b   : > { %p1394_p0 = pnand %p1392_p11, %p1378_p13  ;;  %p1400_p12 = scmp.lt.s32.totalorder %s1398_s20, %s1391_s13 }
  0x3d   : > { %p1395_p5 = pneg %p1394_p0  ;;  %p1401_p4 = por %p1400_p12, %p1399_p3 }
  0x3f   : > { %p1402_p6 = pnand %p1401_p4, %p1395_p5 }
  0x41   : > { %1405 = shalt.err (!%p1402_p6)
}
  0x42   : > { %1294 = dma.hbm_to_vmem [thread:$0]  (!%p1613_p8), %s1607_s23, 128, %s1609_s25, %s150_s27  }
  0x43   : > { %p2404_p9 = scmp.lt.s32.totalorder %s1490_s7, 3  ;;  %p2405_p10 = scmp.ge.s32.totalorder %s1490_s7, 1 }
  0x45   : > { %p182_p13 = pnand %p2405_p10, %p2404_p9 }
  0x46   : > { %s1649_s21 = sand.u32 (!%p182_p13), 1, %s1474_s1  }
  0x47   : > { %185 = sbr.rel (%p182_p13) target bundleno = 519 (0x207), region = 28  ;;  %s1206_s22 = sshll.u32 (!%p182_p13), %s1649_s21, 3 }
  0x48   : > { %s188_s24 = scalar_lea.sflag (!%p182_p13), [#allocation6], %s1649_s21  ;;  %s1653_s28 = scalar_lea.vmem (!%p182_p13), [#allocation5], %s1206_s22 }
  0x4e   : > { %1461 = dma.done.wait (%p1585_p2), %s188_s24, 128  }
  0x4f   : > { %1463 = vsyncadd (%p1585_p2), %s188_s24, 4294967168  ;;  %p223_p3 = scmp.lt.s32.totalorder %s1482_s5, 1  ;;  %s239_s23 = sld [smem:[#allocation3 + %s1482_s5]]  ;;  %v1495_v0 = vmov 0.0  }
  0x50   : > { %s240_s25 = sld [smem:[#allocation4 + %s1482_s5]]  ;;  %s1662_s26 = scalar_lea.vmem [#allocation8], %s1206_s22 }
  0x51   : > { %237 = vst [vmem:[%s1662_s26] sm:$0xff] %v1495_v0  ;;  %s224_s27 = scalar_select %p223_p3, %s1482_s5, 1 }
  0x53   : > { %s1219_s29 = sshll.u32 %s224_s27, 2 }
  0x54   : > { %s230_s11 = scalar_lea.vmem %s2395_s3, %s1219_s29 }
  0x55   : > { %p1210_p5 = scmp.le.s32.totalorder %s239_s23, 0 }
  0x56   : > { %p1211_p2 = scmp.ge.s32.totalorder %s240_s25, 0 }
  0x58   : > { %p243_p8 = pnand %p1211_p2, %p1210_p5 }
  0x59   : > { %v248_v1 = vld [vmem:[%s230_s11] sm:$0xf] (!%p243_p8)  ;;  %v288_v2 = vlaneseq (!%p243_p8)  ;;  %v1496_v41 = vmov (!%p243_p8), 0  }
  0x5a   : > { %246 = sbr.rel (%p243_p8) target bundleno = 494 (0x1ee), region = 40  ;;  %v249_v3 = vadd.f32 (!%p243_p8), 1.0, %v248_v1 }
  0x5b   : > { %v1669_v5 = vshrl.u32 (!%p243_p8), %v288_v2, 7 }
  0x5c   : > { %v250_v4 = vmul.f32 (!%p243_p8), 16.0, %v249_v3 }
  0x5d   : > { %v1672_v8 = vadd.s32 (!%p243_p8), 8, %v1669_v5  ;;  %v1675_v9 = vsub.s32 (!%p243_p8), 1, %v1669_v5  ;;  %v1678_v11 = vsub.s32 (!%p243_p8), 3, %v1669_v5  ;;  %v1681_v12 = vadd.s32 (!%p243_p8), 16, %v1669_v5 }
  0x5e   : > { %v1212_v6 = vadd.f32 (!%p243_p8), -1.0, %v250_v4  ;;  %v1684_v13 = vadd.s32 (!%p243_p8), 24, %v1669_v5  ;;  %v1687_v14 = vadd.s32 (!%p243_p8), 32, %v1669_v5  ;;  %v1690_v15 = vadd.s32 (!%p243_p8), 40, %v1669_v5 }
  0x5f   : > { %v1693_v16 = vadd.s32 (!%p243_p8), 48, %v1669_v5  ;;  %v1696_v17 = vadd.s32 (!%p243_p8), 56, %v1669_v5  ;;  %v1699_v20 = vadd.s32 (!%p243_p8), 64, %v1669_v5  ;;  %v1702_v21 = vadd.s32 (!%p243_p8), 72, %v1669_v5 }
  0x60   : > { %v252_v7 = vmul.f32 (!%p243_p8), 0.5, %v1212_v6  ;;  %v1705_v22 = vadd.s32 (!%p243_p8), 80, %v1669_v5  ;;  %v1708_v23 = vadd.s32 (!%p243_p8), 88, %v1669_v5  ;;  %v1711_v24 = vadd.s32 (!%p243_p8), 96, %v1669_v5 }
  0x61   : > { %v1714_v25 = vadd.s32 104, %v1669_v5  ;;  %v1717_v28 = vadd.s32 112, %v1669_v5  ;;  %v1720_v29 = vadd.s32 120, %v1669_v5  ;;  %v1723_v30 = vadd.s32 128, %v1669_v5 }
  0x62   : > { %v253_v10 = vfloor.f32 %v252_v7  ;;  %v1726_v31 = vadd.s32 136, %v1669_v5  ;;  %v1729_v32 = vadd.s32 144, %v1669_v5  ;;  %v1732_v33 = vadd.s32 152, %v1669_v5 }
  0x63   : > { %v1739_v39 = vadd.s32 160, %v1669_v5  ;;  %v1742_v40 = vadd.s32 168, %v1669_v5  ;;  %v1751_v48 = vadd.s32 176, %v1669_v5  ;;  %v1756_v52 = vadd.s32 184, %v1669_v5 }
  0x64   : > { %v1285_v18 = vtrunc.f32 %v253_v10  ;;  %v256_v19 = vsub.f32 %v252_v7, %v253_v10  ;;  %v1769_v58 = vadd.s32 192, %v1669_v5  ;;  %v1772_v59 = vadd.s32 200, %v1669_v5 }
  0x65   : > { %v1775_v60 = vadd.s32 208, %v1669_v5  ;;  %v1792_v3 = vadd.s32 216, %v1669_v5 }
  0x66   : > { %v1286_v26 = vcvt.f32.s32 %v1285_v18  ;;  %v257_v27 = vsub.f32 1.0, %v256_v19  ;;  %v278_v43 = vrot.slane %v256_v19, 7 }
  0x68   : > { %v255_v34 = vadd.s32 1, %v1286_v26  ;;  %vm258_vm0 = vcmp.ge.s32.totalorder %v1286_v26, 0  ;;  %vm259_vm1 = vcmp.lt.s32.totalorder %v1286_v26, 16  ;;  %v269_v35 = vrot.slane %v257_v27, 7 }
  0x69   : > { %vm1734_vm2 = vmand %vm258_vm0, %vm259_vm1  ;;  %v321_v37 = vmul.u32 16, %v1286_v26  ;;  %v322_v38 = vrot.slane %v1286_v26, 7  ;;  %v280_v50 = vmul.f32 %v278_v43, %v257_v27  ;;  %v286_v57 = vmul.f32 %v278_v43, %v256_v19 }
  0x6a   : > { %vm261_vm3 = vcmp.ge.s32.totalorder %v255_v34, 0  ;;  %vm262_vm4 = vcmp.lt.s32.totalorder %v255_v34, 16  ;;  %v264_v42 = vsel %vm1734_vm2, 1, %v1496_v41  ;;  %v271_v46 = vmul.f32 %v269_v35, %v257_v27 }
  0x6b   : > { %vm1746_vm5 = vmand %vm261_vm3, %vm262_vm4  ;;  %v265_v45 = vrot.slane %v264_v42, 7  ;;  %v323_v47 = vadd.s32 %v322_v38, %v321_v37  ;;  %v283_v51 = vmul.f32 %v269_v35, %v256_v19 }
  0x6c   : > { %v273_v49 = vsel %vm1746_vm5, 1, %v1496_v41 }
  0x6d   : > { %vm1758_vm6 = vcmp.ne.s32.totalorder %v265_v45, 0  ;;  %v274_v54 = vrot.slane %v273_v49, 7  ;;  %v334_v55 = vrot.slane %v323_v47, %v1678_v11  ;;  %v330_v56 = vrot.slane %v323_v47, %v1675_v9 }
  0x6e   : > { %vm267_vm7 = vmand %vm1734_vm2, %vm1758_vm6 }
  0x6f   : > { %v272_v61 = vsel %vm267_vm7, %v271_v46, 0.0  ;;  %vm275_vm8 = vcmp.ne.s32.totalorder %v274_v54, 0  ;;  %vm282_vm9 = vmand %vm1746_vm5, %vm1758_vm6  ;;  %v1782_v62 = vrot.slane %v334_v55, %v1675_v9  ;;  %v1785_v63 = vrot.slane %v330_v56, %v1675_v9 }
  0x70   : > { %vm276_vm10 = vmand %vm1734_vm2, %vm275_vm8  ;;  %v284_v0 = vsel %vm282_vm9, %v283_v51, 0.0  ;;  %v920_v1 = vrot.slane %v272_v61, %v1678_v11  ;;  %v916_v2 = vrot.slane %v272_v61, %v1675_v9 }
  0x71   : > { %v281_v4 = vsel %vm276_vm10, %v280_v50, 0.0  ;;  %vm285_vm11 = vmand %vm1746_vm5, %vm275_vm8  ;;  %v344_v6 = vsub.s32 %v1669_v5, %v1782_v62  ;;  %v346_v7 = vsub.s32 %v1672_v8, %v1782_v62  ;;  %v754_v10 = vrot.slane %v284_v0, %v1678_v11 }
  0x72   : > { %v287_v18 = vsel %vm285_vm11, %v286_v57, 0.0  ;;  %v837_v19 = vrot.slane %v281_v4, %v1678_v11  ;;  %v1803_v26 = vrot.slane %v920_v1, %v1675_v9  ;;  %v343_v27 = vsub.s32 %v1669_v5, %v1785_v63 }
  0x73   : > { %vm408_vm12 = vcmp.eq.s32.totalorder %v344_v6, 0  ;;  %vm410_vm13 = vcmp.eq.s32.totalorder %v346_v7, 0  ;;  %vm472_vm14 = vcmp.eq.s32.totalorder %v344_v6, 1  ;;  %vm474_vm15 = vcmp.eq.s32.totalorder %v346_v7, 1 }
  0x74   : > { %vm536_vm0 = vcmp.eq.s32.totalorder %v344_v6, 16  ;;  %vm538_vm1 = vcmp.eq.s32.totalorder %v346_v7, 16  ;;  %vm600_vm2 = vcmp.eq.s32.totalorder %v344_v6, 17  ;;  %vm602_vm3 = vcmp.eq.s32.totalorder %v346_v7, 17 }
  0x75   : > { %v671_v34 = vrot.slane %v287_v18, %v1678_v11  ;;  %v1809_v35 = vrot.slane %v754_v10, %v1675_v9  ;;  %v1812_v36 = vrot.slane %v837_v19, %v1675_v9  ;;  %v345_v37 = vsub.s32 %v1672_v8, %v1785_v63 }
  0x76   : > { %vm407_vm4 = vcmp.eq.s32.totalorder %v343_v27, 0  ;;  %vm471_vm5 = vcmp.eq.s32.totalorder %v343_v27, 1  ;;  %vm535_vm6 = vcmp.eq.s32.totalorder %v343_v27, 16  ;;  %vm599_vm7 = vcmp.eq.s32.totalorder %v343_v27, 17 }
  0x77   : > { %v1817_v38 = vrot.slane %v671_v34, %v1675_v9  ;;  %vm409_vm8 = vcmp.eq.s32.totalorder %v345_v37, 0  ;;  %vm473_vm9 = vcmp.eq.s32.totalorder %v345_v37, 1  ;;  %vm537_vm10 = vcmp.eq.s32.totalorder %v345_v37, 16 }
  0x78   : > { %vm601_vm11 = vcmp.eq.s32.totalorder %v345_v37, 17  ;;  %v667_v11 = vrot.slane %v287_v18, %v1675_v9  ;;  %v750_v41 = vrot.slane %v284_v0, %v1675_v9  ;;  %v833_v42 = vrot.slane %v281_v4, %v1675_v9 }
  0x79   : > { %v683_v8 = vsel %vm600_vm2, %v1817_v38, 0.0  ;;  %v685_v43 = vsel %vm602_vm3, %v1817_v38, 0.0  ;;  %v1827_v44 = vrot.slane %v916_v2, %v1675_v9  ;;  %v348_v45 = vsub.s32 %v1681_v12, %v1782_v62 }
  0x7a   : > { %v766_v46 = vsel %vm536_vm0, %v1809_v35, %v683_v8  ;;  %v768_v47 = vsel %vm538_vm1, %v1809_v35, %v685_v43  ;;  %v1836_v49 = vrot.slane %v667_v11, %v1675_v9  ;;  %v1839_v50 = vrot.slane %v750_v41, %v1675_v9 }
  0x7b   : > { %v849_v51 = vsel %vm472_vm14, %v1812_v36, %v766_v46  ;;  %v851_v53 = vsel %vm474_vm15, %v1812_v36, %v768_v47  ;;  %v1846_v54 = vrot.slane %v833_v42, %v1675_v9  ;;  %v350_v55 = vsub.s32 %v1684_v13, %v1782_v62 }
  0x7c   : > { %v932_v56 = vsel %vm408_vm12, %v1803_v26, %v849_v51  ;;  %v934_v57 = vsel %vm410_vm13, %v1803_v26, %v851_v53  ;;  %v682_v61 = vsel %vm599_vm7, %v1836_v49, 0.0  ;;  %v684_v0 = vsel %vm601_vm11, %v1836_v49, 0.0 }
  0x7d   : > { %v1221_v1 = vpack.c.bf16 %v934_v57, %v932_v56  ;;  %v765_v9 = vsel %vm535_vm6, %v1839_v50, %v682_v61  ;;  %v767_v2 = vsel %vm537_vm10, %v1839_v50, %v684_v0  ;;  %vm412_vm14 = vcmp.eq.s32.totalorder %v348_v45, 0 }
  0x7e   : > { %v848_v4 = vsel %vm471_vm5, %v1846_v54, %v765_v9  ;;  %v850_v6 = vsel %vm473_vm9, %v1846_v54, %v767_v2  ;;  %vm414_vm12 = vcmp.eq.s32.totalorder %v350_v55, 0  ;;  %vm476_vm13 = vcmp.eq.s32.totalorder %v348_v45, 1 }
  0x7f   : > { %1222 = vmatprep.subr.bf16.mxu0 %v1221_v1  ;;  %v931_v7 = vsel %vm407_vm4, %v1827_v44, %v848_v4  ;;  %v933_v10 = vsel %vm409_vm8, %v1827_v44, %v850_v6  ;;  %vm478_vm15 = vcmp.eq.s32.totalorder %v350_v55, 1  ;;  %vm540_vm0 = vcmp.eq.s32.totalorder %v348_v45, 16 }
  0x80   : > { %v1223_v18 = vpack.c.bf16 %v933_v10, %v931_v7  ;;  %vm542_vm1 = vcmp.eq.s32.totalorder %v350_v55, 16  ;;  %vm604_vm2 = vcmp.eq.s32.totalorder %v348_v45, 17  ;;  %vm606_vm3 = vcmp.eq.s32.totalorder %v350_v55, 17 }
  0x81   : > { %v687_v19 = vsel %vm604_vm2, %v1817_v38, 0.0  ;;  %v689_v34 = vsel %vm606_vm3, %v1817_v38, 0.0  ;;  %v347_v11 = vsub.s32 %v1681_v12, %v1785_v63  ;;  %v349_v27 = vsub.s32 %v1684_v13, %v1785_v63 }
  0x82   : > { %1224 = vmatpush1.bf16.msra.mxu0 %v1223_v18  ;;  %v770_v37 = vsel %vm540_vm0, %v1809_v35, %v687_v19  ;;  %v772_v41 = vsel %vm542_vm1, %v1809_v35, %v689_v34  ;;  %v352_v42 = vsub.s32 %v1687_v14, %v1782_v62  ;;  %v354_v8 = vsub.s32 %v1690_v15, %v1782_v62 }
  0x83   : > { %v853_v43 = vsel %vm476_vm13, %v1812_v36, %v770_v37  ;;  %v855_v12 = vsel %vm478_vm15, %v1812_v36, %v772_v41  ;;  %vm411_vm4 = vcmp.eq.s32.totalorder %v347_v11, 0  ;;  %vm413_vm5 = vcmp.eq.s32.totalorder %v349_v27, 0 }
  0x84   : > { %v936_v13 = vsel %vm412_vm14, %v1803_v26, %v853_v43  ;;  %v938_v46 = vsel %vm414_vm12, %v1803_v26, %v855_v12  ;;  %vm475_vm6 = vcmp.eq.s32.totalorder %v347_v11, 1  ;;  %vm477_vm7 = vcmp.eq.s32.totalorder %v349_v27, 1 }
  0x85   : > { %v1225_v47 = vpack.c.bf16 %v938_v46, %v936_v13  ;;  %vm539_vm8 = vcmp.eq.s32.totalorder %v347_v11, 16  ;;  %vm541_vm9 = vcmp.eq.s32.totalorder %v349_v27, 16  ;;  %vm603_vm10 = vcmp.eq.s32.totalorder %v347_v11, 17 }
  0x86   : > { %vm605_vm11 = vcmp.eq.s32.totalorder %v349_v27, 17  ;;  %v686_v51 = vsel %vm603_vm10, %v1836_v49, 0.0  ;;  %vm416_vm13 = vcmp.eq.s32.totalorder %v352_v42, 0  ;;  %vm418_vm0 = vcmp.eq.s32.totalorder %v354_v8, 0 }
  0x87   : > { %1226 = vmatprep.subr.bf16.mxu0 %v1225_v47  ;;  %v688_v53 = vsel %vm605_vm11, %v1836_v49, 0.0  ;;  %v769_v45 = vsel %vm539_vm8, %v1839_v50, %v686_v51  ;;  %vm480_vm14 = vcmp.eq.s32.totalorder %v352_v42, 1  ;;  %vm482_vm15 = vcmp.eq.s32.totalorder %v354_v8, 1 }
  0x88   : > { %v771_v55 = vsel %vm541_vm9, %v1839_v50, %v688_v53  ;;  %v852_v56 = vsel %vm475_vm6, %v1846_v54, %v769_v45  ;;  %vm544_vm12 = vcmp.eq.s32.totalorder %v352_v42, 16  ;;  %vm546_vm1 = vcmp.eq.s32.totalorder %v354_v8, 16 }
  0x89   : > { %v854_v57 = vsel %vm477_vm7, %v1846_v54, %v771_v55  ;;  %v935_v61 = vsel %vm411_vm4, %v1827_v44, %v852_v56  ;;  %vm608_vm2 = vcmp.eq.s32.totalorder %v352_v42, 17  ;;  %vm610_vm3 = vcmp.eq.s32.totalorder %v354_v8, 17 }
  0x8a   : > { %v937_v0 = vsel %vm413_vm5, %v1827_v44, %v854_v57  ;;  %v691_v1 = vsel %vm608_vm2, %v1817_v38, 0.0  ;;  %v693_v9 = vsel %vm610_vm3, %v1817_v38, 0.0  ;;  %v351_v2 = vsub.s32 %v1687_v14, %v1785_v63 }
  0x8b   : > { %v1227_v4 = vpack.c.bf16 %v937_v0, %v935_v61  ;;  %v774_v6 = vsel %vm544_vm12, %v1809_v35, %v691_v1  ;;  %v776_v7 = vsel %vm546_vm1, %v1809_v35, %v693_v9  ;;  %v353_v10 = vsub.s32 %v1690_v15, %v1785_v63 }
  0x8c   : > { %v857_v18 = vsel %vm480_vm14, %v1812_v36, %v774_v6  ;;  %v859_v19 = vsel %vm482_vm15, %v1812_v36, %v776_v7  ;;  %vm415_vm4 = vcmp.eq.s32.totalorder %v351_v2, 0  ;;  %vm479_vm5 = vcmp.eq.s32.totalorder %v351_v2, 1 }
  0x8d   : > { %1228 = vmatpush1.bf16.msra.mxu0 %v1227_v4  ;;  %v940_v14 = vsel %vm416_vm13, %v1803_v26, %v857_v18  ;;  %v942_v34 = vsel %vm418_vm0, %v1803_v26, %v859_v19  ;;  %vm417_vm6 = vcmp.eq.s32.totalorder %v353_v10, 0  ;;  %vm481_vm7 = vcmp.eq.s32.totalorder %v353_v10, 1 }
  0x8e   : > { %v1229_v11 = vpack.c.bf16 %v942_v34, %v940_v14  ;;  %vm543_vm8 = vcmp.eq.s32.totalorder %v351_v2, 16  ;;  %vm545_vm9 = vcmp.eq.s32.totalorder %v353_v10, 16  ;;  %vm607_vm10 = vcmp.eq.s32.totalorder %v351_v2, 17 }
  0x8f   : > { %vm609_vm11 = vcmp.eq.s32.totalorder %v353_v10, 17  ;;  %v690_v15 = vsel %vm607_vm10, %v1836_v49, 0.0  ;;  %v356_v27 = vsub.s32 %v1693_v16, %v1782_v62  ;;  %v358_v37 = vsub.s32 %v1696_v17, %v1782_v62 }
  0x90   : > { %1230 = vmatprep.subr.bf16.mxu0 %v1229_v11  ;;  %v692_v41 = vsel %vm609_vm11, %v1836_v49, 0.0  ;;  %v773_v42 = vsel %vm543_vm8, %v1839_v50, %v690_v15  ;;  %v355_v8 = vsub.s32 %v1693_v16, %v1785_v63  ;;  %v357_v43 = vsub.s32 %v1696_v17, %v1785_v63 }
  0x91   : > { %v775_v12 = vsel %vm545_vm9, %v1839_v50, %v692_v41  ;;  %v856_v13 = vsel %vm479_vm5, %v1846_v54, %v773_v42  ;;  %vm420_vm13 = vcmp.eq.s32.totalorder %v356_v27, 0  ;;  %vm422_vm0 = vcmp.eq.s32.totalorder %v358_v37, 0 }
  0x92   : > { %v858_v46 = vsel %vm481_vm7, %v1846_v54, %v775_v12  ;;  %v939_v47 = vsel %vm415_vm4, %v1827_v44, %v856_v13  ;;  %vm484_vm14 = vcmp.eq.s32.totalorder %v356_v27, 1  ;;  %vm486_vm15 = vcmp.eq.s32.totalorder %v358_v37, 1 }
  0x93   : > { %v941_v16 = vsel %vm417_vm6, %v1827_v44, %v858_v46  ;;  %vm548_vm12 = vcmp.eq.s32.totalorder %v356_v27, 16  ;;  %vm550_vm1 = vcmp.eq.s32.totalorder %v358_v37, 16  ;;  %vm612_vm2 = vcmp.eq.s32.totalorder %v356_v27, 17 }
  0x94   : > { %v1231_v17 = vpack.c.bf16 %v941_v16, %v939_v47  ;;  %vm614_vm3 = vcmp.eq.s32.totalorder %v358_v37, 17  ;;  %v695_v51 = vsel %vm612_vm2, %v1817_v38, 0.0  ;;  %vm419_vm5 = vcmp.eq.s32.totalorder %v355_v8, 0 }
  0x95   : > { %v697_v53 = vsel %vm614_vm3, %v1817_v38, 0.0  ;;  %v778_v45 = vsel %vm548_vm12, %v1809_v35, %v695_v51  ;;  %vm421_vm7 = vcmp.eq.s32.totalorder %v357_v43, 0  ;;  %vm483_vm8 = vcmp.eq.s32.totalorder %v355_v8, 1 }
  0x96   : > { %1232 = vmatpush1.bf16.msra.mxu0 %v1231_v17  ;;  %v780_v55 = vsel %vm550_vm1, %v1809_v35, %v697_v53  ;;  %v861_v56 = vsel %vm484_vm14, %v1812_v36, %v778_v45  ;;  %vm485_vm4 = vcmp.eq.s32.totalorder %v357_v43, 1  ;;  %vm547_vm6 = vcmp.eq.s32.totalorder %v355_v8, 16 }
  0x97   : > { %v863_v57 = vsel %vm486_vm15, %v1812_v36, %v780_v55  ;;  %v944_v61 = vsel %vm420_vm13, %v1803_v26, %v861_v56  ;;  %vm549_vm9 = vcmp.eq.s32.totalorder %v357_v43, 16  ;;  %vm611_vm10 = vcmp.eq.s32.totalorder %v355_v8, 17 }
  0x98   : > { %v946_v0 = vsel %vm422_vm0, %v1803_v26, %v863_v57  ;;  %vm613_vm11 = vcmp.eq.s32.totalorder %v357_v43, 17  ;;  %v694_v1 = vsel %vm611_vm10, %v1836_v49, 0.0  ;;  %v360_v9 = vsub.s32 %v1699_v20, %v1782_v62 }
  0x99   : > { %v1233_v2 = vpack.c.bf16 %v946_v0, %v944_v61  ;;  %v696_v4 = vsel %vm613_vm11, %v1836_v49, 0.0  ;;  %v777_v6 = vsel %vm547_vm6, %v1839_v50, %v694_v1  ;;  %v362_v7 = vsub.s32 %v1702_v21, %v1782_v62 }
  0x9a   : > { %v779_v10 = vsel %vm549_vm9, %v1839_v50, %v696_v4  ;;  %v860_v18 = vsel %vm483_vm8, %v1846_v54, %v777_v6  ;;  %vm424_vm13 = vcmp.eq.s32.totalorder %v360_v9, 0  ;;  %vm488_vm0 = vcmp.eq.s32.totalorder %v360_v9, 1 }
  0x9b   : > { %1234 = vmatprep.subr.bf16.mxu0 %v1233_v2  ;;  %v862_v19 = vsel %vm485_vm4, %v1846_v54, %v779_v10  ;;  %v943_v14 = vsel %vm419_vm5, %v1827_v44, %v860_v18  ;;  %vm426_vm14 = vcmp.eq.s32.totalorder %v362_v7, 0  ;;  %vm490_vm15 = vcmp.eq.s32.totalorder %v362_v7, 1 }
  0x9c   : > { %v945_v34 = vsel %vm421_vm7, %v1827_v44, %v862_v19  ;;  %vm552_vm12 = vcmp.eq.s32.totalorder %v360_v9, 16  ;;  %vm554_vm1 = vcmp.eq.s32.totalorder %v362_v7, 16  ;;  %vm616_vm2 = vcmp.eq.s32.totalorder %v360_v9, 17 }
  0x9d   : > { %v1235_v11 = vpack.c.bf16 %v945_v34, %v943_v14  ;;  %vm618_vm3 = vcmp.eq.s32.totalorder %v362_v7, 17  ;;  %v699_v15 = vsel %vm616_vm2, %v1817_v38, 0.0  ;;  %v359_v27 = vsub.s32 %v1699_v20, %v1785_v63 }
  0x9e   : > { %v701_v37 = vsel %vm618_vm3, %v1817_v38, 0.0  ;;  %v782_v41 = vsel %vm552_vm12, %v1809_v35, %v699_v15  ;;  %v361_v42 = vsub.s32 %v1702_v21, %v1785_v63  ;;  %v364_v8 = vsub.s32 %v1705_v22, %v1782_v62 }
  0x9f   : > { %1236 = vmatpush1.bf16.msra.mxu0 %v1235_v11  ;;  %v784_v43 = vsel %vm554_vm1, %v1809_v35, %v701_v37  ;;  %v865_v12 = vsel %vm488_vm0, %v1812_v36, %v782_v41  ;;  %vm423_vm5 = vcmp.eq.s32.totalorder %v359_v27, 0  ;;  %vm487_vm7 = vcmp.eq.s32.totalorder %v359_v27, 1 }
  0xa0   : > { %v867_v20 = vsel %vm490_vm15, %v1812_v36, %v784_v43  ;;  %v948_v13 = vsel %vm424_vm13, %v1803_v26, %v865_v12  ;;  %vm425_vm8 = vcmp.eq.s32.totalorder %v361_v42, 0  ;;  %vm489_vm4 = vcmp.eq.s32.totalorder %v361_v42, 1 }
  0xa1   : > { %v950_v21 = vsel %vm426_vm14, %v1803_v26, %v867_v20  ;;  %vm551_vm6 = vcmp.eq.s32.totalorder %v359_v27, 16  ;;  %vm553_vm9 = vcmp.eq.s32.totalorder %v361_v42, 16  ;;  %vm615_vm10 = vcmp.eq.s32.totalorder %v359_v27, 17 }
  0xa2   : > { %v1237_v46 = vpack.c.bf16 %v950_v21, %v948_v13  ;;  %vm617_vm11 = vcmp.eq.s32.totalorder %v361_v42, 17  ;;  %v698_v47 = vsel %vm615_vm10, %v1836_v49, 0.0  ;;  %v366_v16 = vsub.s32 %v1708_v23, %v1782_v62 }
  0xa3   : > { %v700_v17 = vsel %vm617_vm11, %v1836_v49, 0.0  ;;  %v781_v51 = vsel %vm551_vm6, %v1839_v50, %v698_v47  ;;  %vm428_vm13 = vcmp.eq.s32.totalorder %v364_v8, 0  ;;  %vm492_vm0 = vcmp.eq.s32.totalorder %v364_v8, 1 }
  0xa4   : > { %1238 = vmatprep.subr.bf16.mxu0 %v1237_v46  ;;  %v783_v53 = vsel %vm553_vm9, %v1839_v50, %v700_v17  ;;  %v864_v45 = vsel %vm487_vm7, %v1846_v54, %v781_v51  ;;  %vm430_vm14 = vcmp.eq.s32.totalorder %v366_v16, 0  ;;  %vm494_vm15 = vcmp.eq.s32.totalorder %v366_v16, 1 }
  0xa5   : > { %v866_v55 = vsel %vm489_vm4, %v1846_v54, %v783_v53  ;;  %v947_v56 = vsel %vm423_vm5, %v1827_v44, %v864_v45  ;;  %vm556_vm12 = vcmp.eq.s32.totalorder %v364_v8, 16  ;;  %vm558_vm1 = vcmp.eq.s32.totalorder %v366_v16, 16 }
  0xa6   : > { %v949_v57 = vsel %vm425_vm8, %v1827_v44, %v866_v55  ;;  %vm620_vm2 = vcmp.eq.s32.totalorder %v364_v8, 17  ;;  %vm622_vm3 = vcmp.eq.s32.totalorder %v366_v16, 17  ;;  %v363_v61 = vsub.s32 %v1705_v22, %v1785_v63 }
  0xa7   : > { %v1239_v0 = vpack.c.bf16 %v949_v57, %v947_v56  ;;  %v703_v1 = vsel %vm620_vm2, %v1817_v38, 0.0  ;;  %v705_v9 = vsel %vm622_vm3, %v1817_v38, 0.0  ;;  %v365_v2 = vsub.s32 %v1708_v23, %v1785_v63 }
  0xa8   : > { %v786_v4 = vsel %vm556_vm12, %v1809_v35, %v703_v1  ;;  %v788_v6 = vsel %vm558_vm1, %v1809_v35, %v705_v9  ;;  %vm427_vm5 = vcmp.eq.s32.totalorder %v363_v61, 0  ;;  %vm491_vm7 = vcmp.eq.s32.totalorder %v363_v61, 1 }
  0xa9   : > { %1240 = vmatpush1.bf16.msra.mxu0 %v1239_v0  ;;  %v869_v7 = vsel %vm492_vm0, %v1812_v36, %v786_v4  ;;  %v871_v22 = vsel %vm494_vm15, %v1812_v36, %v788_v6  ;;  %vm429_vm8 = vcmp.eq.s32.totalorder %v365_v2, 0  ;;  %vm493_vm4 = vcmp.eq.s32.totalorder %v365_v2, 1 }
  0xaa   : > { %v952_v10 = vsel %vm428_vm13, %v1803_v26, %v869_v7  ;;  %v954_v23 = vsel %vm430_vm14, %v1803_v26, %v871_v22  ;;  %vm555_vm6 = vcmp.eq.s32.totalorder %v363_v61, 16  ;;  %vm557_vm9 = vcmp.eq.s32.totalorder %v365_v2, 16 }
  0xab   : > { %v1241_v18 = vpack.c.bf16 %v954_v23, %v952_v10  ;;  %vm619_vm10 = vcmp.eq.s32.totalorder %v363_v61, 17  ;;  %vm621_vm11 = vcmp.eq.s32.totalorder %v365_v2, 17  ;;  %v368_v19 = vsub.s32 %v1711_v24, %v1782_v62 }
  0xac   : > { %v702_v14 = vsel %vm619_vm10, %v1836_v49, 0.0  ;;  %v704_v34 = vsel %vm621_vm11, %v1836_v49, 0.0  ;;  %v370_v11 = vsub.s32 %v1714_v25, %v1782_v62  ;;  %v367_v15 = vsub.s32 %v1711_v24, %v1785_v63 }
  0xad   : > { %1242 = vmatprep.subr.bf16.mxu0 %v1241_v18  ;;  %v785_v27 = vsel %vm555_vm6, %v1839_v50, %v702_v14  ;;  %v787_v37 = vsel %vm557_vm9, %v1839_v50, %v704_v34  ;;  %vm432_vm13 = vcmp.eq.s32.totalorder %v368_v19, 0  ;;  %vm496_vm0 = vcmp.eq.s32.totalorder %v368_v19, 1 }
  0xae   : > { %v868_v41 = vsel %vm491_vm7, %v1846_v54, %v785_v27  ;;  %v870_v42 = vsel %vm493_vm4, %v1846_v54, %v787_v37  ;;  %vm434_vm14 = vcmp.eq.s32.totalorder %v370_v11, 0  ;;  %vm498_vm15 = vcmp.eq.s32.totalorder %v370_v11, 1 }
  0xaf   : > { %v951_v8 = vsel %vm427_vm5, %v1827_v44, %v868_v41  ;;  %v953_v24 = vsel %vm429_vm8, %v1827_v44, %v870_v42  ;;  %vm560_vm12 = vcmp.eq.s32.totalorder %v368_v19, 16  ;;  %vm562_vm1 = vcmp.eq.s32.totalorder %v370_v11, 16 }
  0xb0   : > { %v1243_v43 = vpack.c.bf16 %v953_v24, %v951_v8  ;;  %vm624_vm2 = vcmp.eq.s32.totalorder %v368_v19, 17  ;;  %vm626_vm3 = vcmp.eq.s32.totalorder %v370_v11, 17  ;;  %v369_v12 = vsub.s32 %v1714_v25, %v1785_v63 }
  0xb1   : > { %v707_v20 = vsel %vm624_vm2, %v1817_v38, 0.0  ;;  %v709_v13 = vsel %vm626_vm3, %v1817_v38, 0.0  ;;  %vm431_vm7 = vcmp.eq.s32.totalorder %v367_v15, 0  ;;  %vm495_vm4 = vcmp.eq.s32.totalorder %v367_v15, 1 }
  0xb2   : > { %1244 = vmatpush1.bf16.msra.mxu0 %v1243_v43  ;;  %v790_v21 = vsel %vm560_vm12, %v1809_v35, %v707_v20  ;;  %v792_v46 = vsel %vm562_vm1, %v1809_v35, %v709_v13  ;;  %vm433_vm5 = vcmp.eq.s32.totalorder %v369_v12, 0  ;;  %vm497_vm8 = vcmp.eq.s32.totalorder %v369_v12, 1 }
  0xb3   : > { %v873_v47 = vsel %vm496_vm0, %v1812_v36, %v790_v21  ;;  %v875_v16 = vsel %vm498_vm15, %v1812_v36, %v792_v46  ;;  %vm559_vm6 = vcmp.eq.s32.totalorder %v367_v15, 16  ;;  %vm561_vm9 = vcmp.eq.s32.totalorder %v369_v12, 16 }
  0xb4   : > { %v956_v25 = vsel %vm432_vm13, %v1803_v26, %v873_v47  ;;  %v958_v17 = vsel %vm434_vm14, %v1803_v26, %v875_v16  ;;  %vm623_vm10 = vcmp.eq.s32.totalorder %v367_v15, 17  ;;  %vm625_vm11 = vcmp.eq.s32.totalorder %v369_v12, 17 }
  0xb5   : > { %v1245_v51 = vpack.c.bf16 %v958_v17, %v956_v25  ;;  %v706_v53 = vsel %vm623_vm10, %v1836_v49, 0.0  ;;  %v708_v45 = vsel %vm625_vm11, %v1836_v49, 0.0  ;;  %v372_v55 = vsub.s32 %v1717_v28, %v1782_v62 }
  0xb6   : > { %v789_v56 = vsel %vm559_vm6, %v1839_v50, %v706_v53  ;;  %v791_v57 = vsel %vm561_vm9, %v1839_v50, %v708_v45  ;;  %v374_v61 = vsub.s32 %v1720_v29, %v1782_v62  ;;  %v371_v0 = vsub.s32 %v1717_v28, %v1785_v63 }
  0xb7   : > { %1246 = vmatprep.subr.bf16.mxu0 %v1245_v51  ;;  %v872_v1 = vsel %vm495_vm4, %v1846_v54, %v789_v56  ;;  %v874_v9 = vsel %vm497_vm8, %v1846_v54, %v791_v57  ;;  %vm436_vm13 = vcmp.eq.s32.totalorder %v372_v55, 0  ;;  %vm500_vm0 = vcmp.eq.s32.totalorder %v372_v55, 1 }
  0xb8   : > { %v955_v2 = vsel %vm431_vm7, %v1827_v44, %v872_v1  ;;  %v957_v4 = vsel %vm433_vm5, %v1827_v44, %v874_v9  ;;  %vm438_vm14 = vcmp.eq.s32.totalorder %v374_v61, 0  ;;  %vm502_vm15 = vcmp.eq.s32.totalorder %v374_v61, 1 }
  0xb9   : > { %v1247_v6 = vpack.c.bf16 %v957_v4, %v955_v2  ;;  %vm564_vm12 = vcmp.eq.s32.totalorder %v372_v55, 16  ;;  %vm566_vm1 = vcmp.eq.s32.totalorder %v374_v61, 16  ;;  %vm628_vm2 = vcmp.eq.s32.totalorder %v372_v55, 17 }
  0xba   : > { %vm630_vm3 = vcmp.eq.s32.totalorder %v374_v61, 17  ;;  %v711_v28 = vsel %vm628_vm2, %v1817_v38, 0.0  ;;  %v373_v7 = vsub.s32 %v1720_v29, %v1785_v63  ;;  %vm435_vm4 = vcmp.eq.s32.totalorder %v371_v0, 0 }
  0xbb   : > { %1248 = vmatpush1.bf16.msra.mxu0 %v1247_v6  ;;  %v713_v22 = vsel %vm630_vm3, %v1817_v38, 0.0  ;;  %v794_v10 = vsel %vm564_vm12, %v1809_v35, %v711_v28  ;;  %vm499_vm7 = vcmp.eq.s32.totalorder %v371_v0, 1  ;;  %vm563_vm5 = vcmp.eq.s32.totalorder %v371_v0, 16 }
  0xbc   : > { %v796_v23 = vsel %vm566_vm1, %v1809_v35, %v713_v22  ;;  %v877_v18 = vsel %vm500_vm0, %v1812_v36, %v794_v10  ;;  %vm437_vm8 = vcmp.eq.s32.totalorder %v373_v7, 0  ;;  %vm501_vm6 = vcmp.eq.s32.totalorder %v373_v7, 1 }
  0xbd   : > { %v879_v19 = vsel %vm502_vm15, %v1812_v36, %v796_v23  ;;  %v960_v29 = vsel %vm436_vm13, %v1803_v26, %v877_v18  ;;  %vm565_vm9 = vcmp.eq.s32.totalorder %v373_v7, 16  ;;  %vm627_vm10 = vcmp.eq.s32.totalorder %v371_v0, 17 }
  0xbe   : > { %v962_v14 = vsel %vm438_vm14, %v1803_v26, %v879_v19  ;;  %vm629_vm11 = vcmp.eq.s32.totalorder %v373_v7, 17  ;;  %v710_v34 = vsel %vm627_vm10, %v1836_v49, 0.0  ;;  %v376_v11 = vsub.s32 %v1723_v30, %v1782_v62 }
  0xbf   : > { %v1249_v15 = vpack.c.bf16 %v962_v14, %v960_v29  ;;  %v712_v27 = vsel %vm629_vm11, %v1836_v49, 0.0  ;;  %v793_v37 = vsel %vm563_vm5, %v1839_v50, %v710_v34  ;;  %v378_v41 = vsub.s32 %v1726_v31, %v1782_v62 }
  0xc0   : > { %v795_v42 = vsel %vm565_vm9, %v1839_v50, %v712_v27  ;;  %v876_v8 = vsel %vm499_vm7, %v1846_v54, %v793_v37  ;;  %vm440_vm13 = vcmp.eq.s32.totalorder %v376_v11, 0  ;;  %vm504_vm0 = vcmp.eq.s32.totalorder %v376_v11, 1 }
  0xc1   : > { %1250 = vmatprep.subr.bf16.mxu0 %v1249_v15  ;;  %v878_v24 = vsel %vm501_vm6, %v1846_v54, %v795_v42  ;;  %v959_v43 = vsel %vm435_vm4, %v1827_v44, %v876_v8  ;;  %vm442_vm14 = vcmp.eq.s32.totalorder %v378_v41, 0  ;;  %vm506_vm15 = vcmp.eq.s32.totalorder %v378_v41, 1 }
  0xc2   : > { %v961_v12 = vsel %vm437_vm8, %v1827_v44, %v878_v24  ;;  %vm568_vm12 = vcmp.eq.s32.totalorder %v376_v11, 16  ;;  %vm570_vm1 = vcmp.eq.s32.totalorder %v378_v41, 16  ;;  %vm632_vm2 = vcmp.eq.s32.totalorder %v376_v11, 17 }
  0xc3   : > { %v1251_v20 = vpack.c.bf16 %v961_v12, %v959_v43  ;;  %vm634_vm3 = vcmp.eq.s32.totalorder %v378_v41, 17  ;;  %v715_v13 = vsel %vm632_vm2, %v1817_v38, 0.0  ;;  %v375_v21 = vsub.s32 %v1723_v30, %v1785_v63 }
  0xc4   : > { %v717_v46 = vsel %vm634_vm3, %v1817_v38, 0.0  ;;  %v798_v47 = vsel %vm568_vm12, %v1809_v35, %v715_v13  ;;  %v377_v16 = vsub.s32 %v1726_v31, %v1785_v63  ;;  %v380_v25 = vsub.s32 %v1729_v32, %v1782_v62 }
  0xc5   : > { %1252 = vmatpush1.bf16.msra.mxu0 %v1251_v20  ;;  %v800_v17 = vsel %vm570_vm1, %v1809_v35, %v717_v46  ;;  %v881_v51 = vsel %vm504_vm0, %v1812_v36, %v798_v47  ;;  %vm439_vm4 = vcmp.eq.s32.totalorder %v375_v21, 0  ;;  %vm503_vm7 = vcmp.eq.s32.totalorder %v375_v21, 1 }
  0xc6   : > { %v883_v30 = vsel %vm506_vm15, %v1812_v36, %v800_v17  ;;  %v964_v53 = vsel %vm440_vm13, %v1803_v26, %v881_v51  ;;  %vm441_vm5 = vcmp.eq.s32.totalorder %v377_v16, 0  ;;  %vm505_vm8 = vcmp.eq.s32.totalorder %v377_v16, 1 }
  0xc7   : > { %v966_v31 = vsel %vm442_vm14, %v1803_v26, %v883_v30  ;;  %vm567_vm6 = vcmp.eq.s32.totalorder %v375_v21, 16  ;;  %vm569_vm9 = vcmp.eq.s32.totalorder %v377_v16, 16  ;;  %vm631_vm10 = vcmp.eq.s32.totalorder %v375_v21, 17 }
  0xc8   : > { %v1253_v45 = vpack.c.bf16 %v966_v31, %v964_v53  ;;  %vm633_vm11 = vcmp.eq.s32.totalorder %v377_v16, 17  ;;  %v714_v55 = vsel %vm631_vm10, %v1836_v49, 0.0  ;;  %v382_v56 = vsub.s32 %v1732_v33, %v1782_v62 }
  0xc9   : > { %v716_v57 = vsel %vm633_vm11, %v1836_v49, 0.0  ;;  %v797_v61 = vsel %vm567_vm6, %v1839_v50, %v714_v55  ;;  %vm444_vm13 = vcmp.eq.s32.totalorder %v380_v25, 0  ;;  %vm508_vm0 = vcmp.eq.s32.totalorder %v380_v25, 1 }
  0xca   : > { %1254 = vmatprep.subr.bf16.mxu0 %v1253_v45  ;;  %v799_v0 = vsel %vm569_vm9, %v1839_v50, %v716_v57  ;;  %v880_v1 = vsel %vm503_vm7, %v1846_v54, %v797_v61  ;;  %vm446_vm14 = vcmp.eq.s32.totalorder %v382_v56, 0  ;;  %vm510_vm15 = vcmp.eq.s32.totalorder %v382_v56, 1 }
  0xcb   : > { %v882_v9 = vsel %vm505_vm8, %v1846_v54, %v799_v0  ;;  %v963_v2 = vsel %vm439_vm4, %v1827_v44, %v880_v1  ;;  %vm572_vm12 = vcmp.eq.s32.totalorder %v380_v25, 16  ;;  %vm574_vm1 = vcmp.eq.s32.totalorder %v382_v56, 16 }
  0xcc   : > { %v965_v4 = vsel %vm441_vm5, %v1827_v44, %v882_v9  ;;  %vm636_vm2 = vcmp.eq.s32.totalorder %v380_v25, 17  ;;  %vm638_vm3 = vcmp.eq.s32.totalorder %v382_v56, 17  ;;  %v379_v6 = vsub.s32 %v1729_v32, %v1785_v63 }
  0xcd   : > { %v1255_v28 = vpack.c.bf16 %v965_v4, %v963_v2  ;;  %v719_v7 = vsel %vm636_vm2, %v1817_v38, 0.0  ;;  %v721_v22 = vsel %vm638_vm3, %v1817_v38, 0.0  ;;  %v381_v10 = vsub.s32 %v1732_v33, %v1785_v63 }
  0xce   : > { %v802_v23 = vsel %vm572_vm12, %v1809_v35, %v719_v7  ;;  %v804_v18 = vsel %vm574_vm1, %v1809_v35, %v721_v22  ;;  %vm443_vm4 = vcmp.eq.s32.totalorder %v379_v6, 0  ;;  %vm507_vm7 = vcmp.eq.s32.totalorder %v379_v6, 1 }
  0xcf   : > { %1256 = vmatpush1.bf16.msra.mxu0 %v1255_v28  ;;  %v885_v19 = vsel %vm508_vm0, %v1812_v36, %v802_v23  ;;  %v887_v32 = vsel %vm510_vm15, %v1812_v36, %v804_v18  ;;  %vm445_vm5 = vcmp.eq.s32.totalorder %v381_v10, 0  ;;  %vm509_vm8 = vcmp.eq.s32.totalorder %v381_v10, 1 }
  0xd0   : > { %v968_v29 = vsel %vm444_vm13, %v1803_v26, %v885_v19  ;;  %v970_v33 = vsel %vm446_vm14, %v1803_v26, %v887_v32  ;;  %vm571_vm6 = vcmp.eq.s32.totalorder %v379_v6, 16  ;;  %vm573_vm9 = vcmp.eq.s32.totalorder %v381_v10, 16 }
  0xd1   : > { %v1257_v14 = vpack.c.bf16 %v970_v33, %v968_v29  ;;  %vm635_vm10 = vcmp.eq.s32.totalorder %v379_v6, 17  ;;  %vm637_vm11 = vcmp.eq.s32.totalorder %v381_v10, 17  ;;  %v384_v34 = vsub.s32 %v1739_v39, %v1782_v62 }
  0xd2   : > { %v718_v11 = vsel %vm635_vm10, %v1836_v49, 0.0  ;;  %v720_v15 = vsel %vm637_vm11, %v1836_v49, 0.0  ;;  %v386_v27 = vsub.s32 %v1742_v40, %v1782_v62  ;;  %v383_v37 = vsub.s32 %v1739_v39, %v1785_v63 }
  0xd3   : > { %1258 = vmatprep.subr.bf16.mxu0 %v1257_v14  ;;  %v801_v41 = vsel %vm571_vm6, %v1839_v50, %v718_v11  ;;  %v803_v42 = vsel %vm573_vm9, %v1839_v50, %v720_v15  ;;  %vm448_vm13 = vcmp.eq.s32.totalorder %v384_v34, 0  ;;  %vm512_vm0 = vcmp.eq.s32.totalorder %v384_v34, 1 }
  0xd4   : > { %v884_v8 = vsel %vm507_vm7, %v1846_v54, %v801_v41  ;;  %v886_v24 = vsel %vm509_vm8, %v1846_v54, %v803_v42  ;;  %vm450_vm14 = vcmp.eq.s32.totalorder %v386_v27, 0  ;;  %vm514_vm15 = vcmp.eq.s32.totalorder %v386_v27, 1 }
  0xd5   : > { %v967_v43 = vsel %vm443_vm4, %v1827_v44, %v884_v8  ;;  %v969_v39 = vsel %vm445_vm5, %v1827_v44, %v886_v24  ;;  %vm576_vm12 = vcmp.eq.s32.totalorder %v384_v34, 16  ;;  %vm578_vm1 = vcmp.eq.s32.totalorder %v386_v27, 16 }
  0xd6   : > { %v1259_v12 = vpack.c.bf16 %v969_v39, %v967_v43  ;;  %vm640_vm2 = vcmp.eq.s32.totalorder %v384_v34, 17  ;;  %vm642_vm3 = vcmp.eq.s32.totalorder %v386_v27, 17  ;;  %v385_v20 = vsub.s32 %v1742_v40, %v1785_v63 }
  0xd7   : > { %v723_v13 = vsel %vm640_vm2, %v1817_v38, 0.0  ;;  %v725_v21 = vsel %vm642_vm3, %v1817_v38, 0.0  ;;  %vm447_vm7 = vcmp.eq.s32.totalorder %v383_v37, 0  ;;  %vm511_vm8 = vcmp.eq.s32.totalorder %v383_v37, 1 }
  0xd8   : > { %1260 = vmatpush1.bf16.msra.mxu0 %v1259_v12  ;;  %v806_v46 = vsel %vm576_vm12, %v1809_v35, %v723_v13  ;;  %v808_v47 = vsel %vm578_vm1, %v1809_v35, %v725_v21  ;;  %vm449_vm4 = vcmp.eq.s32.totalorder %v385_v20, 0  ;;  %vm513_vm5 = vcmp.eq.s32.totalorder %v385_v20, 1 }
  0xd9   : > { %v889_v16 = vsel %vm512_vm0, %v1812_v36, %v806_v46  ;;  %v891_v25 = vsel %vm514_vm15, %v1812_v36, %v808_v47  ;;  %vm575_vm6 = vcmp.eq.s32.totalorder %v383_v37, 16  ;;  %vm577_vm9 = vcmp.eq.s32.totalorder %v385_v20, 16 }
  0xda   : > { %v972_v40 = vsel %vm448_vm13, %v1803_v26, %v889_v16  ;;  %v974_v17 = vsel %vm450_vm14, %v1803_v26, %v891_v25  ;;  %vm639_vm10 = vcmp.eq.s32.totalorder %v383_v37, 17  ;;  %vm641_vm11 = vcmp.eq.s32.totalorder %v385_v20, 17 }
  0xdb   : > { %v1261_v51 = vpack.c.bf16 %v974_v17, %v972_v40  ;;  %v722_v30 = vsel %vm639_vm10, %v1836_v49, 0.0  ;;  %v724_v53 = vsel %vm641_vm11, %v1836_v49, 0.0  ;;  %v388_v31 = vsub.s32 %v1751_v48, %v1782_v62 }
  0xdc   : > { %v805_v45 = vsel %vm575_vm6, %v1839_v50, %v722_v30  ;;  %v807_v55 = vsel %vm577_vm9, %v1839_v50, %v724_v53  ;;  %v390_v56 = vsub.s32 %v1756_v52, %v1782_v62  ;;  %v387_v57 = vsub.s32 %v1751_v48, %v1785_v63 }
  0xdd   : > { %1262 = vmatprep.subr.bf16.mxu0 %v1261_v51  ;;  %v888_v61 = vsel %vm511_vm8, %v1846_v54, %v805_v45  ;;  %v890_v0 = vsel %vm513_vm5, %v1846_v54, %v807_v55  ;;  %vm452_vm13 = vcmp.eq.s32.totalorder %v388_v31, 0  ;;  %vm516_vm0 = vcmp.eq.s32.totalorder %v388_v31, 1 }
  0xde   : > { %v971_v1 = vsel %vm447_vm7, %v1827_v44, %v888_v61  ;;  %v973_v9 = vsel %vm449_vm4, %v1827_v44, %v890_v0  ;;  %vm454_vm14 = vcmp.eq.s32.totalorder %v390_v56, 0  ;;  %vm518_vm15 = vcmp.eq.s32.totalorder %v390_v56, 1 }
  0xdf   : > { %v1263_v2 = vpack.c.bf16 %v973_v9, %v971_v1  ;;  %vm580_vm12 = vcmp.eq.s32.totalorder %v388_v31, 16  ;;  %vm582_vm1 = vcmp.eq.s32.totalorder %v390_v56, 16  ;;  %vm644_vm2 = vcmp.eq.s32.totalorder %v388_v31, 17 }
  0xe0   : > { %vm646_vm3 = vcmp.eq.s32.totalorder %v390_v56, 17  ;;  %v727_v48 = vsel %vm644_vm2, %v1817_v38, 0.0  ;;  %v389_v4 = vsub.s32 %v1756_v52, %v1785_v63  ;;  %vm451_vm8 = vcmp.eq.s32.totalorder %v387_v57, 0 }
  0xe1   : > { %1264 = vmatpush1.bf16.msra.mxu0 %v1263_v2  ;;  %v729_v6 = vsel %vm646_vm3, %v1817_v38, 0.0  ;;  %v810_v28 = vsel %vm580_vm12, %v1809_v35, %v727_v48  ;;  %vm515_vm7 = vcmp.eq.s32.totalorder %v387_v57, 1  ;;  %vm579_vm4 = vcmp.eq.s32.totalorder %v387_v57, 16 }
  0xe2   : > { %v812_v7 = vsel %vm582_vm1, %v1809_v35, %v729_v6  ;;  %v893_v22 = vsel %vm516_vm0, %v1812_v36, %v810_v28  ;;  %vm453_vm5 = vcmp.eq.s32.totalorder %v389_v4, 0  ;;  %vm517_vm6 = vcmp.eq.s32.totalorder %v389_v4, 1 }
  0xe3   : > { %v895_v10 = vsel %vm518_vm15, %v1812_v36, %v812_v7  ;;  %v976_v52 = vsel %vm452_vm13, %v1803_v26, %v893_v22  ;;  %vm581_vm9 = vcmp.eq.s32.totalorder %v389_v4, 16  ;;  %vm643_vm10 = vcmp.eq.s32.totalorder %v387_v57, 17 }
  0xe4   : > { %v978_v23 = vsel %vm454_vm14, %v1803_v26, %v895_v10  ;;  %vm645_vm11 = vcmp.eq.s32.totalorder %v389_v4, 17  ;;  %v726_v18 = vsel %vm643_vm10, %v1836_v49, 0.0  ;;  %v392_v19 = vsub.s32 %v1769_v58, %v1782_v62 }
  0xe5   : > { %v1265_v32 = vpack.c.bf16 %v978_v23, %v976_v52  ;;  %v728_v29 = vsel %vm645_vm11, %v1836_v49, 0.0  ;;  %v809_v33 = vsel %vm579_vm4, %v1839_v50, %v726_v18  ;;  %v394_v14 = vsub.s32 %v1772_v59, %v1782_v62 }
  0xe6   : > { %v811_v34 = vsel %vm581_vm9, %v1839_v50, %v728_v29  ;;  %v892_v11 = vsel %vm515_vm7, %v1846_v54, %v809_v33  ;;  %vm456_vm13 = vcmp.eq.s32.totalorder %v392_v19, 0  ;;  %vm520_vm0 = vcmp.eq.s32.totalorder %v392_v19, 1 }
  0xe7   : > { %1266 = vmatprep.subr.bf16.mxu0 %v1265_v32  ;;  %v894_v15 = vsel %vm517_vm6, %v1846_v54, %v811_v34  ;;  %v975_v27 = vsel %vm451_vm8, %v1827_v44, %v892_v11  ;;  %vm458_vm14 = vcmp.eq.s32.totalorder %v394_v14, 0  ;;  %vm522_vm15 = vcmp.eq.s32.totalorder %v394_v14, 1 }
  0xe8   : > { %v977_v37 = vsel %vm453_vm5, %v1827_v44, %v894_v15  ;;  %vm584_vm12 = vcmp.eq.s32.totalorder %v392_v19, 16  ;;  %vm586_vm1 = vcmp.eq.s32.totalorder %v394_v14, 16  ;;  %vm648_vm2 = vcmp.eq.s32.totalorder %v392_v19, 17 }
  0xe9   : > { %v1267_v41 = vpack.c.bf16 %v977_v37, %v975_v27  ;;  %vm650_vm3 = vcmp.eq.s32.totalorder %v394_v14, 17  ;;  %v731_v42 = vsel %vm648_vm2, %v1817_v38, 0.0  ;;  %v391_v8 = vsub.s32 %v1769_v58, %v1785_v63 }
  0xea   : > { %v733_v24 = vsel %vm650_vm3, %v1817_v38, 0.0  ;;  %v814_v43 = vsel %vm584_vm12, %v1809_v35, %v731_v42  ;;  %v393_v39 = vsub.s32 %v1772_v59, %v1785_v63  ;;  %v396_v12 = vsub.s32 %v1775_v60, %v1782_v62 }
  0xeb   : > { %1268 = vmatpush1.bf16.msra.mxu0 %v1267_v41  ;;  %v816_v20 = vsel %vm586_vm1, %v1809_v35, %v733_v24  ;;  %v897_v13 = vsel %vm520_vm0, %v1812_v36, %v814_v43  ;;  %vm455_vm8 = vcmp.eq.s32.totalorder %v391_v8, 0  ;;  %vm519_vm7 = vcmp.eq.s32.totalorder %v391_v8, 1 }
  0xec   : > { %v899_v58 = vsel %vm522_vm15, %v1812_v36, %v816_v20  ;;  %v980_v21 = vsel %vm456_vm13, %v1803_v26, %v897_v13  ;;  %vm457_vm4 = vcmp.eq.s32.totalorder %v393_v39, 0  ;;  %vm521_vm5 = vcmp.eq.s32.totalorder %v393_v39, 1 }
  0xed   : > { %v982_v59 = vsel %vm458_vm14, %v1803_v26, %v899_v58  ;;  %vm583_vm6 = vcmp.eq.s32.totalorder %v391_v8, 16  ;;  %vm585_vm9 = vcmp.eq.s32.totalorder %v393_v39, 16  ;;  %vm647_vm10 = vcmp.eq.s32.totalorder %v391_v8, 17 }
  0xee   : > { %v1269_v46 = vpack.c.bf16 %v982_v59, %v980_v21  ;;  %vm649_vm11 = vcmp.eq.s32.totalorder %v393_v39, 17  ;;  %v730_v47 = vsel %vm647_vm10, %v1836_v49, 0.0  ;;  %v398_v16 = vsub.s32 %v1792_v3, %v1782_v62 }
  0xef   : > { %v732_v25 = vsel %vm649_vm11, %v1836_v49, 0.0  ;;  %v813_v40 = vsel %vm583_vm6, %v1839_v50, %v730_v47  ;;  %vm460_vm13 = vcmp.eq.s32.totalorder %v396_v12, 0  ;;  %vm524_vm0 = vcmp.eq.s32.totalorder %v396_v12, 1 }
  0xf0   : > { %1270 = vmatprep.subr.bf16.mxu0 %v1269_v46  ;;  %v815_v17 = vsel %vm585_vm9, %v1839_v50, %v732_v25  ;;  %v896_v51 = vsel %vm519_vm7, %v1846_v54, %v813_v40  ;;  %vm462_vm14 = vcmp.eq.s32.totalorder %v398_v16, 0  ;;  %vm526_vm15 = vcmp.eq.s32.totalorder %v398_v16, 1 }
  0xf1   : > { %v898_v30 = vsel %vm521_vm5, %v1846_v54, %v815_v17  ;;  %v979_v53 = vsel %vm455_vm8, %v1827_v44, %v896_v51  ;;  %vm588_vm12 = vcmp.eq.s32.totalorder %v396_v12, 16  ;;  %vm590_vm1 = vcmp.eq.s32.totalorder %v398_v16, 16 }
  0xf2   : > { %v981_v31 = vsel %vm457_vm4, %v1827_v44, %v898_v30  ;;  %vm652_vm2 = vcmp.eq.s32.totalorder %v396_v12, 17  ;;  %vm654_vm3 = vcmp.eq.s32.totalorder %v398_v16, 17  ;;  %v395_v45 = vsub.s32 %v1775_v60, %v1785_v63 }
  0xf3   : > { %v1271_v55 = vpack.c.bf16 %v981_v31, %v979_v53  ;;  %v735_v56 = vsel %vm652_vm2, %v1817_v38, 0.0  ;;  %v737_v57 = vsel %vm654_vm3, %v1817_v38, 0.0  ;;  %v397_v61 = vsub.s32 %v1792_v3, %v1785_v63  ;;  %v247_v31 = vld [vmem:[%s1653_s28] sm:$0xff] }
  0xf4   : > { %v818_v0 = vsel %vm588_vm12, %v1809_v35, %v735_v56  ;;  %v820_v1 = vsel %vm590_vm1, %v1809_v35, %v737_v57  ;;  %vm459_vm8 = vcmp.eq.s32.totalorder %v395_v45, 0  ;;  %vm523_vm7 = vcmp.eq.s32.totalorder %v395_v45, 1 }
  0xf5   : > { %1272 = vmatpush1.bf16.msra.mxu0 %v1271_v55  ;;  %v901_v9 = vsel %vm524_vm0, %v1812_v36, %v818_v0  ;;  %v903_v60 = vsel %vm526_vm15, %v1812_v36, %v820_v1  ;;  %vm461_vm4 = vcmp.eq.s32.totalorder %v397_v61, 0  ;;  %vm525_vm5 = vcmp.eq.s32.totalorder %v397_v61, 1 }
  0xf6   : > { %v984_v2 = vsel %vm460_vm13, %v1803_v26, %v901_v9  ;;  %v986_v3 = vsel %vm462_vm14, %v1803_v26, %v903_v60  ;;  %vm587_vm6 = vcmp.eq.s32.totalorder %v395_v45, 16  ;;  %vm589_vm9 = vcmp.eq.s32.totalorder %v397_v61, 16 }
  0xf7   : > { %v1273_v48 = vpack.c.bf16 %v986_v3, %v984_v2  ;;  %vm651_vm10 = vcmp.eq.s32.totalorder %v395_v45, 17  ;;  %vm653_vm11 = vcmp.eq.s32.totalorder %v397_v61, 17  ;;  %v317_v4 = vadd.s32 224, %v1669_v5  ;;  %v995_v3 = vld [vmem:[%s1662_s26] sm:$0xff] }
  0xf8   : > { %v734_v6 = vsel %vm651_vm10, %v1836_v49, 0.0  ;;  %v736_v28 = vsel %vm653_vm11, %v1836_v49, 0.0  ;;  %v318_v7 = vadd.s32 232, %v1669_v5  ;;  %v319_v22 = vadd.s32 240, %v1669_v5 }
  0xf9   : > { %1274 = vmatprep.subr.bf16.mxu0 %v1273_v48  ;;  %v817_v10 = vsel %vm587_vm6, %v1839_v50, %v734_v6  ;;  %v819_v52 = vsel %vm589_vm9, %v1839_v50, %v736_v28  ;;  %v400_v23 = vsub.s32 %v317_v4, %v1782_v62  ;;  %v399_v18 = vsub.s32 %v317_v4, %v1785_v63 }
  0xfa   : > { %v900_v19 = vsel %vm523_vm7, %v1846_v54, %v817_v10  ;;  %v902_v32 = vsel %vm525_vm5, %v1846_v54, %v819_v52  ;;  %v402_v29 = vsub.s32 %v318_v7, %v1782_v62  ;;  %v401_v33 = vsub.s32 %v318_v7, %v1785_v63 }
  0xfb   : > { %v983_v14 = vsel %vm459_vm8, %v1827_v44, %v900_v19  ;;  %v985_v34 = vsel %vm461_vm4, %v1827_v44, %v902_v32  ;;  %vm464_vm13 = vcmp.eq.s32.totalorder %v400_v23, 0  ;;  %vm528_vm0 = vcmp.eq.s32.totalorder %v400_v23, 1 }
  0xfc   : > { %v1275_v11 = vpack.c.bf16 %v985_v34, %v983_v14  ;;  %vm466_vm14 = vcmp.eq.s32.totalorder %v402_v29, 0  ;;  %vm530_vm15 = vcmp.eq.s32.totalorder %v402_v29, 1  ;;  %vm592_vm12 = vcmp.eq.s32.totalorder %v400_v23, 16 }
  0xfd   : > { %vm594_vm1 = vcmp.eq.s32.totalorder %v402_v29, 16  ;;  %vm656_vm2 = vcmp.eq.s32.totalorder %v400_v23, 17  ;;  %vm658_vm3 = vcmp.eq.s32.totalorder %v402_v29, 17  ;;  %vm463_vm7 = vcmp.eq.s32.totalorder %v399_v18, 0 }
  0xfe   : > { %1276 = vmatpush1.bf16.msra.mxu0 %v1275_v11  ;;  %v739_v15 = vsel %vm656_vm2, %v1817_v38, 0.0  ;;  %v741_v27 = vsel %vm658_vm3, %v1817_v38, 0.0  ;;  %vm465_vm5 = vcmp.eq.s32.totalorder %v401_v33, 0  ;;  %vm527_vm8 = vcmp.eq.s32.totalorder %v399_v18, 1 }
  0xff   : > { %v822_v37 = vsel %vm592_vm12, %v1809_v35, %v739_v15  ;;  %v824_v41 = vsel %vm594_vm1, %v1809_v35, %v741_v27  ;;  %vm529_vm4 = vcmp.eq.s32.totalorder %v401_v33, 1  ;;  %vm591_vm6 = vcmp.eq.s32.totalorder %v399_v18, 16 }
 0x100   : > { %v905_v42 = vsel %vm528_vm0, %v1812_v36, %v822_v37  ;;  %v907_v8 = vsel %vm530_vm15, %v1812_v36, %v824_v41  ;;  %vm593_vm9 = vcmp.eq.s32.totalorder %v401_v33, 16  ;;  %vm655_vm10 = vcmp.eq.s32.totalorder %v399_v18, 17 }
 0x101   : > { %v988_v24 = vsel %vm464_vm13, %v1803_v26, %v905_v42  ;;  %v990_v43 = vsel %vm466_vm14, %v1803_v26, %v907_v8  ;;  %vm657_vm11 = vcmp.eq.s32.totalorder %v401_v33, 17  ;;  %v738_v39 = vsel %vm655_vm10, %v1836_v49, 0.0 }
 0x102   : > { %v1277_v12 = vpack.c.bf16 %v990_v43, %v988_v24  ;;  %v740_v20 = vsel %vm657_vm11, %v1836_v49, 0.0  ;;  %v821_v13 = vsel %vm591_vm6, %v1839_v50, %v738_v39  ;;  %v320_v58 = vadd.s32 248, %v1669_v5 }
 0x103   : > { %v823_v21 = vsel %vm593_vm9, %v1839_v50, %v740_v20  ;;  %v904_v59 = vsel %vm527_vm8, %v1846_v54, %v821_v13  ;;  %v404_v46 = vsub.s32 %v319_v22, %v1782_v62  ;;  %v403_v47 = vsub.s32 %v319_v22, %v1785_v63 }
 0x104   : > { %1278 = vmatprep.subr.bf16.mxu0 %v1277_v12  ;;  %v906_v16 = vsel %vm529_vm4, %v1846_v54, %v823_v21  ;;  %v987_v25 = vsel %vm463_vm7, %v1827_v44, %v904_v59  ;;  %v406_v40 = vsub.s32 %v320_v58, %v1782_v62  ;;  %v405_v5 = vsub.s32 %v320_v58, %v1785_v63 }
 0x105   : > { %v989_v17 = vsel %vm465_vm5, %v1827_v44, %v906_v16  ;;  %vm468_vm13 = vcmp.eq.s32.totalorder %v404_v46, 0  ;;  %vm532_vm0 = vcmp.eq.s32.totalorder %v404_v46, 1  ;;  %vm596_vm14 = vcmp.eq.s32.totalorder %v404_v46, 16 }
 0x106   : > { %v1279_v51 = vpack.c.bf16 %v989_v17, %v987_v25  ;;  %vm470_vm15 = vcmp.eq.s32.totalorder %v406_v40, 0  ;;  %vm534_vm12 = vcmp.eq.s32.totalorder %v406_v40, 1  ;;  %vm598_vm1 = vcmp.eq.s32.totalorder %v406_v40, 16 }
 0x107   : > { %vm660_vm2 = vcmp.eq.s32.totalorder %v404_v46, 17  ;;  %vm662_vm3 = vcmp.eq.s32.totalorder %v406_v40, 17  ;;  %vm467_vm8 = vcmp.eq.s32.totalorder %v403_v47, 0  ;;  %vm469_vm4 = vcmp.eq.s32.totalorder %v405_v5, 0 }
 0x108   : > { %1280 = vmatpush1.bf16.msra.mxu0 %v1279_v51  ;;  %v743_v62 = vsel %vm660_vm2, %v1817_v38, 0.0  ;;  %v745_v63 = vsel %vm662_vm3, %v1817_v38, 0.0  ;;  %vm531_vm7 = vcmp.eq.s32.totalorder %v403_v47, 1  ;;  %vm533_vm6 = vcmp.eq.s32.totalorder %v405_v5, 1 }
 0x109   : > { %v826_v30 = vsel %vm596_vm14, %v1809_v35, %v743_v62  ;;  %v828_v53 = vsel %vm598_vm1, %v1809_v35, %v745_v63  ;;  %vm595_vm5 = vcmp.eq.s32.totalorder %v403_v47, 16  ;;  %vm597_vm9 = vcmp.eq.s32.totalorder %v405_v5, 16 }
 0x10a   : > { %v909_v45 = vsel %vm532_vm0, %v1812_v36, %v826_v30  ;;  %v911_v55 = vsel %vm534_vm12, %v1812_v36, %v828_v53  ;;  %vm659_vm10 = vcmp.eq.s32.totalorder %v403_v47, 17  ;;  %vm661_vm11 = vcmp.eq.s32.totalorder %v405_v5, 17 }
 0x10b   : > { %v992_v38 = vsel %vm468_vm13, %v1803_v26, %v909_v45  ;;  %v994_v56 = vsel %vm470_vm15, %v1803_v26, %v911_v55  ;;  %v742_v57 = vsel %vm659_vm10, %v1836_v49, 0.0  ;;  %v744_v35 = vsel %vm661_vm11, %v1836_v49, 0.0 }
 0x10c   : > { %v1281_v61 = vpack.c.bf16 %v994_v56, %v992_v38  ;;  %v825_v0 = vsel %vm595_vm5, %v1839_v50, %v742_v57  ;;  %v827_v1 = vsel %vm597_vm9, %v1839_v50, %v744_v35  ;;  %v997_v36 = vcombine.high %v247_v31, %v247_v31 }
 0x10d   : > { %v908_v9 = vsel %vm531_vm7, %v1846_v54, %v825_v0  ;;  %v910_v60 = vsel %vm533_vm6, %v1846_v54, %v827_v1 }
 0x10e   : > { %1282 = vmatprep.subr.bf16.mxu0 %v1281_v61  ;;  %v991_v26 = vsel %vm467_vm8, %v1827_v44, %v908_v9  ;;  %v993_v49 = vsel %vm469_vm4, %v1827_v44, %v910_v60  ;;  %1063 = vmatprep.mubr.f32.mxu0 %v997_v36 }
 0x10f   : > { %v1283_v2 = vpack.c.bf16 %v993_v49, %v991_v26 }
 0x111   : > { %1284 = vmatpush1.bf16.msra.mxu0 %v1283_v2 }
 0x114   : > { %1064 = vmatmul.mubr.f32.vlgmr.msra.gmra.mrb[0].mxu0 %v247_v31 }
 0x1e7   : > { %v1065_v50 = vpop.f32.mrb[0].mxu0 }
 0x1e8   : > { %v1067_v48 = vpop.f32.mrb[1].mxu0 }
 0x1e9   : > { %v1072_v4 = vcombine.low %v1065_v50, %v1067_v48 }
 0x1eb   : > { %v1074_v6 = vadd.f32 %v1072_v4, %v995_v3 }
 0x1ed   : > { %1075 = vst [vmem:[%s1662_s26] sm:$0xff] %v1074_v6 }
 0x1ee PF: > { %s1220_s14 = sshll.u32 %s1482_s5, 7  ;;  %s1093_s19 = sshll.u32 %s1662_s26, 4  ;;  %s1094_s19 = int_to_ptr.vmem [resolvable:$true] %s1093_s19 }
 0x1ef   : > { %s2349_s18 = scalar_lea.hbm %s2396_s4, %s1220_s14  ;;  %s1077_s20 = scalar_lea.sflag [#allocation7], %s1649_s21 }
 0x1f0   : > { %s1406_s22 = scalar_lea.vmem %s1094_s19, 128  ;;  %p2412_p7 = scmp.ne.s32.totalorder %s2401_s15, 0 }
 0x1f1   : > { %p1407_p1 = scmp.ne.s32.totalorder %s1094_s19, %s1406_s22  ;;  %s1497_s24 = smov [#allocation8]  }
 0x1f2   : > { %s1410_s28 = sshll.u32 %s1497_s24, 4  ;;  %s1411_s28 = int_to_ptr.vmem [resolvable:$false] %s1410_s28 }
 0x1f3   : > { %p1408_p11 = pnand %p1407_p1, %p2412_p7  ;;  %s1412_s23 = scalar_lea.vmem %s1411_s28, 256 }
 0x1f4   : > { %p1413_p12 = scmp.lt.s32.totalorder %s1094_s19, %s1411_s28  ;;  %p1414_p4 = scmp.lt.s32.totalorder %s1412_s23, %s1406_s22 }
 0x1f5   : > { %p1409_p0 = pneg %p1408_p11 }
 0x1f6   : > { %p1415_p6 = por %p1414_p4, %p1413_p12 }
 0x1f8   : > { %p1416_p9 = pnand %p1415_p6, %p1409_p0 }
 0x1fa   : > { %1419 = shalt.err (!%p1416_p9)
}
 0x1fb   : > { %s1420_s5 = scalar_lea.hbm %s2349_s18, 128  ;;  %s1424_s26 = scalar_lea.hbm %s2396_s4, 256 }
 0x1fc   : > { %p1421_p10 = scmp.ne.s32.totalorder %s2349_s18, %s1420_s5  ;;  %p1425_p5 = scmp.lt.u32.totalorder %s2349_s18, %s2396_s4 }
 0x1fd   : > { %p1426_p2 = scmp.lt.u32.totalorder %s1424_s26, %s1420_s5  ;;  %p1428_p1 = scmp.lt.u32.totalorder %s1420_s5, %s2349_s18 }
 0x1fe   : > { %p1422_p13 = pnand %p1421_p10, %p2412_p7 }
 0x1ff   : > { %p1427_p8 = por %p1426_p2, %p1425_p5 }
 0x200   : > { %p1423_p3 = pneg %p1422_p13 }
 0x201   : > { %p1429_p11 = por %p1428_p1, %p1427_p8 }
 0x203   : > { %p1430_p0 = pnand %p1429_p11, %p1423_p3 }
 0x205   : > { %1433 = shalt.err (!%p1430_p0)
}
 0x206   : > { %1289 = dma.vmem_to_hbm [thread:$0]  (%p2412_p7), %s1094_s19, 128, %s2349_s18, %s1077_s20  }
 0x207 PF: > { %s1105_s8 = sand.u32 1, %s1470_s0   ;;  %p2413_p12 = scmp.ne.s32.totalorder %s2402_s17, 0 }
 0x208   : > { %p2414_p4 = scmp.ge.s32.totalorder %s1490_s7, 2  ;;  %s1106_s9 = scalar_lea.sflag [#allocation7], %s1105_s8 }
 0x20a   : > { %p1296_p6 = pnand %p2414_p4, %p2413_p12 }
 0x20c   : > { %1465 = dma.done.wait (!%p1296_p6), %s1106_s9, 128  }
 0x20d   : > { %1467 = vsyncadd (!%p1296_p6), %s1106_s9, 4294967168  ;;  %s28_s7 = sadd.s32 1, %s1490_s7   ;;  %s2415_s0 = smov %s1474_s1 }
 0x20e   : > { %p25_p9 = scmp.ge.s32.totalorder %s28_s7, 4   ;;  %s2416_s1 = smov %s1478_s30 }
 0x20f   : > { %s2417_s30 = smov %s1594_s16  ;;  %s2418_s5 = smov %s1486_s6 }
 0x210   : > { %s2419_s6 = smov %s2421_s10  ;;  %27 = sbr.rel (!%p25_p9) target bundleno = 28 (0x1c), region = 84 }
 0x217   :  { %1111 = vsyncpa [#allocation6], 1 }
 0x218   :  { %1113 = vsyncpa [#allocation6 + $0x1], 1 }
 0x219   :  { %1114 = vsyncpa [#allocation7], 1 }
 0x21a   :  { %1116 = vsyncpa [#allocation7 + $0x1], 1 }

</bundles_post_ra>
